<compile_context>
chip_gen: v7x
topology: tpu7x:2x2x1
jax: 0.10.0
libtpu: 0.0.40
codegen_flags: <defaults>
</compile_context>

<pallas_src>
import numpy as np
import jax
import jax.numpy as jnp
from jax.experimental import pallas as pl
from jax.experimental.pallas import tpu as pltpu

_BN_EPS = 1e-5


# ----------------------------------------------------------------------------
# Host-side constant builders (numpy, static shapes only)
# ----------------------------------------------------------------------------
def _bilinear_matrix(out_size, in_size):
    """1-D bilinear interpolation matrix (out, in), PyTorch align_corners=False."""
    A = np.zeros((out_size, in_size), dtype=np.float32)
    if in_size == 1:
        A[:, 0] = 1.0
        return A
    scale = in_size / out_size
    for o in range(out_size):
        src = (o + 0.5) * scale - 0.5
        if src < 0.0:
            src = 0.0
        i0 = min(int(np.floor(src)), in_size - 1)
        i1 = min(i0 + 1, in_size - 1)
        frac = float(src - i0)
        A[o, i0] += 1.0 - frac
        A[o, i1] += frac
    return A


def _upsample_matrix(Hi, Wi, Ho, Wo):
    """(Hi*Wi, Ho*Wo) bilinear operator built separably: xu = x2d @ U."""
    Ah = _bilinear_matrix(Ho, Hi)          # (Ho, Hi)
    Aw = _bilinear_matrix(Wo, Wi)          # (Wo, Wi)
    U = np.einsum('oh,pw->hwop', Ah, Aw).reshape(Hi * Wi, Ho * Wo)
    return U.astype(np.float32)


def _tap_masks(Ho, Wo):
    """(9, 1, Ho*Wo) 0/1 masks: tap t = kh*3+kw is valid where the shifted source
    pixel lies inside the (zero-padded) image (also kills cross-row wrap of rolls)."""
    oh = np.arange(Ho)[:, None]
    ow = np.arange(Wo)[None, :]
    m = np.zeros((9, 1, Ho * Wo), dtype=np.float32)
    for kh in range(3):
        for kw in range(3):
            dh, dw = kh - 1, kw - 1
            valid = ((oh + dh >= 0) & (oh + dh < Ho) &
                     (ow + dw >= 0) & (ow + dw < Wo))
            m[kh * 3 + kw, 0, :] = valid.reshape(-1).astype(np.float32)
    return m


# ----------------------------------------------------------------------------
# Pallas kernels
# ----------------------------------------------------------------------------
def _make_conv_kernel(Cin, Cout, HW, Ho, Wo):
    inv_hw = 1.0 / float(HW)

    def kernel(x_ref, u_ref, wc_ref, bias_ref, mask_ref,
               y_ref, mu_ref, m2_ref):
        # ---- bilinear upsample: one MXU matmul into the lane-dense (Cin, HW) layout
        xu = jnp.dot(x_ref[0], u_ref[...],
                     preferred_element_type=jnp.float32)            # (Cin, HW) f32

        # ---- 3x3 conv (1x1 folded into the weights): 9 lane-rolls + border masks,
        #      one stacked (Cout, 9*Cin) x (9*Cin, HW) matmul, f32 accumulation.
        taps = []
        for kh in range(3):
            for kw in range(3):
                t = kh * 3 + kw
                s = (kh - 1) * Wo + (kw - 1)                  # flat source offset
                rolled = pltpu.roll(xu, (-s) % HW, 1) if s != 0 else xu
                taps.append((rolled * mask_ref[t]).astype(jnp.bfloat16))
        stacked = jnp.concatenate(taps, axis=0)                      # (9*Cin, HW)
        y3 = jnp.dot(wc_ref[...], stacked,
                     preferred_element_type=jnp.float32) + bias_ref[...]
        y_ref[0] = y3                                                # (Cout, HW) f32

        # ---- BatchNorm partial stats, fused while y3 is live:
        #      per-image channel mean and centered sum of squares.
        mu = jnp.sum(y3, axis=1, keepdims=True) * inv_hw             # (Cout, 1)
        d = y3 - mu
        mu_ref[0] = mu
        m2_ref[0] = jnp.sum(d * d, axis=1, keepdims=True)

    return kernel


def _bn_apply_kernel(y_ref, scale_ref, shift_ref, o_ref):
    # y * gamma/sqrt(var+eps) + (beta - mean*gamma/sqrt(var+eps))
    o_ref[0] = y_ref[0] * scale_ref[...] + shift_ref[...]


# ----------------------------------------------------------------------------
# Wrapper
# ----------------------------------------------------------------------------
def upsampling_forward(x, w1, b1, w3, b3, gamma, beta, size):
    """x: NCHW float32. Returns NCHW float32 of shape (N, Cout, *size)."""
    N, Cin, Hi, Wi = x.shape
    Ho, Wo = size
    HW = Ho * Wo
    HiWi = Hi * Wi
    Cout = w3.shape[0]

    # --- fold the 1x1 conv into the 3x3 conv (PyTorch skips the 1x1 iff Cin==Cout)
    w3f = jnp.asarray(w3, jnp.float32).reshape(Cout, Cout, 3, 3)
    b3v = jnp.asarray(b3, jnp.float32).reshape(Cout)
    if Cin != Cout:
        w1m = jnp.asarray(w1, jnp.float32).reshape(Cout, Cin)
        b1v = jnp.asarray(b1, jnp.float32).reshape(Cout)
        w_comb = jnp.einsum('octk,ci->oitk', w3f, w1m)          # (Cout, Cin, 3, 3)
        wb1 = jnp.einsum('octk,c->otk', w3f, b1v).reshape(Cout, 9)
    else:
        w_comb = w3f                                            # 1x1 not applied
        wb1 = jnp.zeros((Cout, 9), jnp.float32)

    # stacked conv weights, column order [(kh*3+kw)*Cin + i]
    wc = jnp.transpose(w_comb, (0, 2, 3, 1)).reshape(Cout, 9 * Cin).astype(jnp.bfloat16)

    # border masks + border-aware bias plane (b1 seen only through valid taps) + b3
    masks_np = _tap_masks(Ho, Wo)                               # (9, 1, HW)
    masks = jnp.asarray(masks_np)
    valid = jnp.asarray(masks_np.reshape(9, HW))
    bias_plane = b3v[:, None] + wb1 @ valid                     # (Cout, HW) f32

    # bilinear upsample operator (f32 to stay close to the PyTorch reference)
    u_mat = jnp.asarray(_upsample_matrix(Hi, Wi, Ho, Wo))       # (HiWi, HW)

    # channel-major, spatial-flattened input layout
    x2 = jnp.asarray(x, jnp.float32).reshape(N, Cin, HiWi)

    # --- VMEM budget: constants + double-buffered per-image blocks + kernel temps
    const_bytes = u_mat.size * 4 + wc.size * 2 + bias_plane.size * 4 + masks.size * 4
    blk_bytes = Cin * HiWi * 4 + Cout * HW * 4 + 2 * Cout * 4
    temp_bytes = Cin * HW * 4 + 2 * (9 * Cin * HW * 2) + Cout * HW * 4
    need = const_bytes + 2 * blk_bytes + temp_bytes
    vmem_limit = int(min(40 * 1024 * 1024, max(4 * need, 8 * 1024 * 1024)))

    conv_kernel = _make_conv_kernel(Cin, Cout, HW, Ho, Wo)
    y, mu_n, m2_n = pl.pallas_call(
        conv_kernel,
        grid=(N,),
        in_specs=[
            pl.BlockSpec((1, Cin, HiWi), lambda n: (n, 0, 0)),   # x (per image)
            pl.BlockSpec((HiWi, HW), lambda n: (0, 0)),          # U (resident)
            pl.BlockSpec((Cout, 9 * Cin), lambda n: (0, 0)),     # folded 3x3 weights
            pl.BlockSpec((Cout, HW), lambda n: (0, 0)),          # bias plane
            pl.BlockSpec((9, 1, HW), lambda n: (0, 0, 0)),       # border masks
        ],
        out_specs=(
            pl.BlockSpec((1, Cout, HW), lambda n: (n, 0, 0)),    # conv output
            pl.BlockSpec((1, Cout, 1), lambda n: (n, 0, 0)),     # per-image mean
            pl.BlockSpec((1, Cout, 1), lambda n: (n, 0, 0)),     # per-image M2
        ),
        out_shape=(
            jax.ShapeDtypeStruct((N, Cout, HW), jnp.float32),
            jax.ShapeDtypeStruct((N, Cout, 1), jnp.float32),
            jax.ShapeDtypeStruct((N, Cout, 1), jnp.float32),
        ),
        compiler_params=pltpu.CompilerParams(
            dimension_semantics=("parallel",),
            vmem_limit_bytes=vmem_limit),
    )(x2, u_mat, wc, bias_plane, masks)

    # --- combine per-image stats (Chan) -> training-mode batch stats, biased var
    mu_n = mu_n[:, :, 0]                                        # (N, Cout)
    m2_n = m2_n[:, :, 0]
    count = float(N * HW)
    mean = jnp.mean(mu_n, axis=0)                               # (Cout,)
    var = (jnp.sum(m2_n, axis=0)
           + HW * jnp.sum((mu_n - mean[None, :]) ** 2, axis=0)) / count
    g = jnp.asarray(gamma, jnp.float32).reshape(Cout)
    be = jnp.asarray(beta, jnp.float32).reshape(Cout)
    scale = g * jax.lax.rsqrt(var + _BN_EPS)                    # (Cout,)
    shift = be - mean * scale
    scale = scale.reshape(Cout, 1)
    shift = shift.reshape(Cout, 1)

    # --- apply BatchNorm (reuses the conv-output buffer via aliasing)
    out = pl.pallas_call(
        _bn_apply_kernel,
        grid=(N,),
        in_specs=[
            pl.BlockSpec((1, Cout, HW), lambda n: (n, 0, 0)),
            pl.BlockSpec((Cout, 1), lambda n: (0, 0)),
            pl.BlockSpec((Cout, 1), lambda n: (0, 0)),
        ],
        out_specs=pl.BlockSpec((1, Cout, HW), lambda n: (n, 0, 0)),
        out_shape=jax.ShapeDtypeStruct((N, Cout, HW), jnp.float32),
        input_output_aliases={0: 0},
        compiler_params=pltpu.CompilerParams(
            dimension_semantics=("parallel",)),
    )(y, scale, shift)

    # (N, Cout, Ho*Wo) is channel-major -> plain reshape to NCHW.
    return out.reshape(N, Cout, Ho, Wo)


# ----------------------------------------------------------------------------
# Demo
# ----------------------------------------------------------------------------
if __name__ == "__main__":
    key = jax.random.PRNGKey(0)
    kx, kw1, kb1, kw3, kb3, kg, kbeta = jax.random.split(key, 7)

    N, Cin, Hi, Wi = 2, 16, 8, 8
    Cout = 128
    size = (16, 16)

    x = jax.random.normal(kx, (N, Cin, Hi, Wi), dtype=jnp.float32)
    w1 = 0.1 * jax.random.normal(kw1, (Cout, Cin, 1, 1), dtype=jnp.float32)
    b1 = 0.1 * jax.random.normal(kb1, (Cout,), dtype=jnp.float32)
    w3 = 0.1 * jax.random.normal(kw3, (Cout, Cout, 3, 3), dtype=jnp.float32)
    b3 = 0.1 * jax.random.normal(kb3, (Cout,), dtype=jnp.float32)
    gamma = 1.0 + 0.1 * jax.random.normal(kg, (Cout,), dtype=jnp.float32)
    beta = 0.1 * jax.random.normal(kbeta, (Cout,), dtype=jnp.float32)

    out = upsampling_forward(x, w1, b1, w3, b3, gamma, beta, size)
    out = jax.block_until_ready(out)

    assert out.shape == (N, Cout, size[0], size[1]), out.shape
    assert bool(jnp.all(jnp.isfinite(out)))
    print("KERNEL_OK")
</pallas_src>

<mosaic_0001>
module attributes {stable_mosaic.version = 11 : i64} {
  func.func @kernel(%arg0: i32, %arg1: memref<1x16x64xf32, #tpu.memory_space<vmem>>, %arg2: memref<64x256xf32, #tpu.memory_space<vmem>>, %arg3: memref<128x144xbf16, #tpu.memory_space<vmem>>, %arg4: memref<128x256xf32, #tpu.memory_space<vmem>>, %arg5: memref<9x1x256xf32, #tpu.memory_space<vmem>>, %arg6: memref<1x128x256xf32, #tpu.memory_space<vmem>>, %arg7: memref<1x128x1xf32, #tpu.memory_space<vmem>>, %arg8: memref<1x128x1xf32, #tpu.memory_space<vmem>>) attributes {dimension_semantics = [#tpu.dimension_semantics<parallel>], iteration_bounds = array<i64: 2>, scalar_prefetch = 0 : i64, scratch_operands = 0 : i64, tpu.core_type = #tpu.core_type<tc>, window_params = [{transform_indices = @transform_0, window_bounds = array<i64: 1, 16, 64>}, {pipeline_mode = #tpu.pipeline_mode<synchronous>, transform_indices = @transform_1, window_bounds = array<i64: 64, 256>}, {pipeline_mode = #tpu.pipeline_mode<synchronous>, transform_indices = @transform_2, window_bounds = array<i64: 128, 144>}, {pipeline_mode = #tpu.pipeline_mode<synchronous>, transform_indices = @transform_3, window_bounds = array<i64: 128, 256>}, {pipeline_mode = #tpu.pipeline_mode<synchronous>, transform_indices = @transform_4, window_bounds = array<i64: 9, 1, 256>}, {transform_indices = @transform_5, window_bounds = array<i64: 1, 128, 256>}, {transform_indices = @transform_6, window_bounds = array<i64: 1, 128, 1>}, {transform_indices = @transform_7, window_bounds = array<i64: 1, 128, 1>}]} {
    %c0 = arith.constant 0 : index
    %c0_0 = arith.constant 0 : index
    %c0_1 = arith.constant 0 : index
    %0 = vector.load %arg1[%c0, %c0_0, %c0_1] : memref<1x16x64xf32, #tpu.memory_space<vmem>>, vector<1x16x64xf32>
    %1 = vector.shape_cast %0 : vector<1x16x64xf32> to vector<16x64xf32>
    %c0_2 = arith.constant 0 : index
    %c0_3 = arith.constant 0 : index
    %2 = vector.load %arg2[%c0_2, %c0_3] : memref<64x256xf32, #tpu.memory_space<vmem>>, vector<64x256xf32>
    %cst = arith.constant dense<0.000000e+00> : vector<16x256xf32>
    %3 = tpu.matmul %1, %2, %cst {dimension_numbers = #tpu.dot_dimension_numbers<[1], [0], [0], [1], [0, 0, 1, 1], [], []>} : vector<16x64xf32>, vector<64x256xf32>, vector<16x256xf32> -> vector<16x256xf32>
    %c17_i32 = arith.constant 17 : i32
    %4 = tpu.dynamic_rotate %3 by %c17_i32 dim 1 : vector<16x256xf32>, i32 -> vector<16x256xf32>
    %c0_4 = arith.constant 0 : index
    %c0_5 = arith.constant 0 : index
    %c0_6 = arith.constant 0 : index
    %5 = vector.load %arg5[%c0_4, %c0_5, %c0_6] : memref<9x1x256xf32, #tpu.memory_space<vmem>>, vector<1x1x256xf32>
    %6 = vector.shape_cast %5 : vector<1x1x256xf32> to vector<1x256xf32>
    %7 = vector.broadcast %6 : vector<1x256xf32> to vector<16x256xf32>
    %8 = arith.mulf %4, %7 : vector<16x256xf32>
    %9 = arith.truncf %8 : vector<16x256xf32> to vector<16x256xbf16>
    %c16_i32 = arith.constant 16 : i32
    %10 = tpu.dynamic_rotate %3 by %c16_i32 dim 1 : vector<16x256xf32>, i32 -> vector<16x256xf32>
    %c1 = arith.constant 1 : index
    %c0_7 = arith.constant 0 : index
    %c0_8 = arith.constant 0 : index
    %11 = vector.load %arg5[%c1, %c0_7, %c0_8] : memref<9x1x256xf32, #tpu.memory_space<vmem>>, vector<1x1x256xf32>
    %12 = vector.shape_cast %11 : vector<1x1x256xf32> to vector<1x256xf32>
    %13 = vector.broadcast %12 : vector<1x256xf32> to vector<16x256xf32>
    %14 = arith.mulf %10, %13 : vector<16x256xf32>
    %15 = arith.truncf %14 : vector<16x256xf32> to vector<16x256xbf16>
    %c15_i32 = arith.constant 15 : i32
    %16 = tpu.dynamic_rotate %3 by %c15_i32 dim 1 : vector<16x256xf32>, i32 -> vector<16x256xf32>
    %c2 = arith.constant 2 : index
    %c0_9 = arith.constant 0 : index
    %c0_10 = arith.constant 0 : index
    %17 = vector.load %arg5[%c2, %c0_9, %c0_10] : memref<9x1x256xf32, #tpu.memory_space<vmem>>, vector<1x1x256xf32>
    %18 = vector.shape_cast %17 : vector<1x1x256xf32> to vector<1x256xf32>
    %19 = vector.broadcast %18 : vector<1x256xf32> to vector<16x256xf32>
    %20 = arith.mulf %16, %19 : vector<16x256xf32>
    %21 = arith.truncf %20 : vector<16x256xf32> to vector<16x256xbf16>
    %c1_i32 = arith.constant 1 : i32
    %22 = tpu.dynamic_rotate %3 by %c1_i32 dim 1 : vector<16x256xf32>, i32 -> vector<16x256xf32>
    %c3 = arith.constant 3 : index
    %c0_11 = arith.constant 0 : index
    %c0_12 = arith.constant 0 : index
    %23 = vector.load %arg5[%c3, %c0_11, %c0_12] : memref<9x1x256xf32, #tpu.memory_space<vmem>>, vector<1x1x256xf32>
    %24 = vector.shape_cast %23 : vector<1x1x256xf32> to vector<1x256xf32>
    %25 = vector.broadcast %24 : vector<1x256xf32> to vector<16x256xf32>
    %26 = arith.mulf %22, %25 : vector<16x256xf32>
    %27 = arith.truncf %26 : vector<16x256xf32> to vector<16x256xbf16>
    %c4 = arith.constant 4 : index
    %c0_13 = arith.constant 0 : index
    %c0_14 = arith.constant 0 : index
    %28 = vector.load %arg5[%c4, %c0_13, %c0_14] : memref<9x1x256xf32, #tpu.memory_space<vmem>>, vector<1x1x256xf32>
    %29 = vector.shape_cast %28 : vector<1x1x256xf32> to vector<1x256xf32>
    %30 = vector.broadcast %29 : vector<1x256xf32> to vector<16x256xf32>
    %31 = arith.mulf %3, %30 : vector<16x256xf32>
    %32 = arith.truncf %31 : vector<16x256xf32> to vector<16x256xbf16>
    %c255_i32 = arith.constant 255 : i32
    %33 = tpu.dynamic_rotate %3 by %c255_i32 dim 1 : vector<16x256xf32>, i32 -> vector<16x256xf32>
    %c5 = arith.constant 5 : index
    %c0_15 = arith.constant 0 : index
    %c0_16 = arith.constant 0 : index
    %34 = vector.load %arg5[%c5, %c0_15, %c0_16] : memref<9x1x256xf32, #tpu.memory_space<vmem>>, vector<1x1x256xf32>
    %35 = vector.shape_cast %34 : vector<1x1x256xf32> to vector<1x256xf32>
    %36 = vector.broadcast %35 : vector<1x256xf32> to vector<16x256xf32>
    %37 = arith.mulf %33, %36 : vector<16x256xf32>
    %38 = arith.truncf %37 : vector<16x256xf32> to vector<16x256xbf16>
    %c241_i32 = arith.constant 241 : i32
    %39 = tpu.dynamic_rotate %3 by %c241_i32 dim 1 : vector<16x256xf32>, i32 -> vector<16x256xf32>
    %c6 = arith.constant 6 : index
    %c0_17 = arith.constant 0 : index
    %c0_18 = arith.constant 0 : index
    %40 = vector.load %arg5[%c6, %c0_17, %c0_18] : memref<9x1x256xf32, #tpu.memory_space<vmem>>, vector<1x1x256xf32>
    %41 = vector.shape_cast %40 : vector<1x1x256xf32> to vector<1x256xf32>
    %42 = vector.broadcast %41 : vector<1x256xf32> to vector<16x256xf32>
    %43 = arith.mulf %39, %42 : vector<16x256xf32>
    %44 = arith.truncf %43 : vector<16x256xf32> to vector<16x256xbf16>
    %c240_i32 = arith.constant 240 : i32
    %45 = tpu.dynamic_rotate %3 by %c240_i32 dim 1 : vector<16x256xf32>, i32 -> vector<16x256xf32>
    %c7 = arith.constant 7 : index
    %c0_19 = arith.constant 0 : index
    %c0_20 = arith.constant 0 : index
    %46 = vector.load %arg5[%c7, %c0_19, %c0_20] : memref<9x1x256xf32, #tpu.memory_space<vmem>>, vector<1x1x256xf32>
    %47 = vector.shape_cast %46 : vector<1x1x256xf32> to vector<1x256xf32>
    %48 = vector.broadcast %47 : vector<1x256xf32> to vector<16x256xf32>
    %49 = arith.mulf %45, %48 : vector<16x256xf32>
    %50 = arith.truncf %49 : vector<16x256xf32> to vector<16x256xbf16>
    %c239_i32 = arith.constant 239 : i32
    %51 = tpu.dynamic_rotate %3 by %c239_i32 dim 1 : vector<16x256xf32>, i32 -> vector<16x256xf32>
    %c8 = arith.constant 8 : index
    %c0_21 = arith.constant 0 : index
    %c0_22 = arith.constant 0 : index
    %52 = vector.load %arg5[%c8, %c0_21, %c0_22] : memref<9x1x256xf32, #tpu.memory_space<vmem>>, vector<1x1x256xf32>
    %53 = vector.shape_cast %52 : vector<1x1x256xf32> to vector<1x256xf32>
    %54 = vector.broadcast %53 : vector<1x256xf32> to vector<16x256xf32>
    %55 = arith.mulf %51, %54 : vector<16x256xf32>
    %56 = arith.truncf %55 : vector<16x256xf32> to vector<16x256xbf16>
    %57 = tpu.concatenate %9, %15, %21, %27, %32, %38, %44, %50, %56 in 0 : vector<16x256xbf16>, vector<16x256xbf16>, vector<16x256xbf16>, vector<16x256xbf16>, vector<16x256xbf16>, vector<16x256xbf16>, vector<16x256xbf16>, vector<16x256xbf16>, vector<16x256xbf16> -> vector<144x256xbf16>
    %c0_23 = arith.constant 0 : index
    %c0_24 = arith.constant 0 : index
    %58 = vector.load %arg3[%c0_23, %c0_24] : memref<128x144xbf16, #tpu.memory_space<vmem>>, vector<128x144xbf16>
    %cst_25 = arith.constant dense<0.000000e+00> : vector<128x256xf32>
    %59 = tpu.matmul %58, %57, %cst_25 {dimension_numbers = #tpu.dot_dimension_numbers<[1], [0], [0], [1], [0, 0, 1, 1], [], []>} : vector<128x144xbf16>, vector<144x256xbf16>, vector<128x256xf32> -> vector<128x256xf32>
    %c0_26 = arith.constant 0 : index
    %c0_27 = arith.constant 0 : index
    %60 = vector.load %arg4[%c0_26, %c0_27] : memref<128x256xf32, #tpu.memory_space<vmem>>, vector<128x256xf32>
    %61 = arith.addf %59, %60 : vector<128x256xf32>
    %c0_28 = arith.constant 0 : index
    %c0_29 = arith.constant 0 : index
    %c0_30 = arith.constant 0 : index
    %62 = vector.load %arg6[%c0_28, %c0_29, %c0_30] : memref<1x128x256xf32, #tpu.memory_space<vmem>>, vector<1x128x256xf32>
    %63 = vector.shape_cast %62 : vector<1x128x256xf32> to vector<128x256xf32>
    %64 = vector.shape_cast %61 : vector<128x256xf32> to vector<1x128x256xf32>
    tpu.vector_store %arg6[%c0_28, %c0_29, %c0_30], %64 {strides = array<i32>} : memref<1x128x256xf32, #tpu.memory_space<vmem>>, vector<1x128x256xf32>,
    %cst_31 = arith.constant dense<0.000000e+00> : vector<128xf32>
    %65 = vector.multi_reduction <add>, %61, %cst_31 [1] : vector<128x256xf32> to vector<128xf32>
    %66 = vector.shape_cast %65 : vector<128xf32> to vector<128x1xf32>
    %cst_32 = arith.constant 3.906250e-03 : f32
    %67 = vector.broadcast %cst_32 : f32 to vector<128x1xf32>
    %68 = arith.mulf %66, %67 : vector<128x1xf32>
    %69 = vector.broadcast %68 : vector<128x1xf32> to vector<128x256xf32>
    %70 = arith.subf %61, %69 : vector<128x256xf32>
    %c0_33 = arith.constant 0 : index
    %c0_34 = arith.constant 0 : index
    %c0_35 = arith.constant 0 : index
    %71 = vector.load %arg7[%c0_33, %c0_34, %c0_35] : memref<1x128x1xf32, #tpu.memory_space<vmem>>, vector<1x128x1xf32>
    %72 = vector.shape_cast %71 : vector<1x128x1xf32> to vector<128x1xf32>
    %73 = vector.shape_cast %68 : vector<128x1xf32> to vector<1x128x1xf32>
    tpu.vector_store %arg7[%c0_33, %c0_34, %c0_35], %73 {strides = array<i32>} : memref<1x128x1xf32, #tpu.memory_space<vmem>>, vector<1x128x1xf32>,
    %74 = arith.mulf %70, %70 : vector<128x256xf32>
    %cst_36 = arith.constant dense<0.000000e+00> : vector<128xf32>
    %75 = vector.multi_reduction <add>, %74, %cst_36 [1] : vector<128x256xf32> to vector<128xf32>
    %76 = vector.shape_cast %75 : vector<128xf32> to vector<128x1xf32>
    %c0_37 = arith.constant 0 : index
    %c0_38 = arith.constant 0 : index
    %c0_39 = arith.constant 0 : index
    %77 = vector.load %arg8[%c0_37, %c0_38, %c0_39] : memref<1x128x1xf32, #tpu.memory_space<vmem>>, vector<1x128x1xf32>
    %78 = vector.shape_cast %77 : vector<1x128x1xf32> to vector<128x1xf32>
    %79 = vector.shape_cast %76 : vector<128x1xf32> to vector<1x128x1xf32>
    tpu.vector_store %arg8[%c0_37, %c0_38, %c0_39], %79 {strides = array<i32>} : memref<1x128x1xf32, #tpu.memory_space<vmem>>, vector<1x128x1xf32>,
    return
  }
  func.func @transform_0(%arg0: i32) -> (i32, i32, i32) {
    %c0_i32 = arith.constant 0 : i32
    %c0_i32_0 = arith.constant 0 : i32
    %c0_i32_1 = arith.constant 0 : i32
    return %arg0, %c0_i32, %c0_i32_0 : i32, i32, i32
  }
  func.func @transform_1(%arg0: i32) -> (i32, i32) {
    %c0_i32 = arith.constant 0 : i32
    %c0_i32_0 = arith.constant 0 : i32
    %c0_i32_1 = arith.constant 0 : i32
    return %c0_i32, %c0_i32_0 : i32, i32
  }
  func.func @transform_2(%arg0: i32) -> (i32, i32) {
    %c0_i32 = arith.constant 0 : i32
    %c0_i32_0 = arith.constant 0 : i32
    %c0_i32_1 = arith.constant 0 : i32
    return %c0_i32, %c0_i32_0 : i32, i32
  }
  func.func @transform_3(%arg0: i32) -> (i32, i32) {
    %c0_i32 = arith.constant 0 : i32
    %c0_i32_0 = arith.constant 0 : i32
    %c0_i32_1 = arith.constant 0 : i32
    return %c0_i32, %c0_i32_0 : i32, i32
  }
  func.func @transform_4(%arg0: i32) -> (i32, i32, i32) {
    %c0_i32 = arith.constant 0 : i32
    %c0_i32_0 = arith.constant 0 : i32
    %c0_i32_1 = arith.constant 0 : i32
    %c0_i32_2 = arith.constant 0 : i32
    return %c0_i32, %c0_i32_0, %c0_i32_1 : i32, i32, i32
  }
  func.func @transform_5(%arg0: i32) -> (i32, i32, i32) {
    %c0_i32 = arith.constant 0 : i32
    %c0_i32_0 = arith.constant 0 : i32
    %c0_i32_1 = arith.constant 0 : i32
    return %arg0, %c0_i32, %c0_i32_0 : i32, i32, i32
  }
  func.func @transform_6(%arg0: i32) -> (i32, i32, i32) {
    %c0_i32 = arith.constant 0 : i32
    %c0_i32_0 = arith.constant 0 : i32
    %c0_i32_1 = arith.constant 0 : i32
    return %arg0, %c0_i32, %c0_i32_0 : i32, i32, i32
  }
  func.func @transform_7(%arg0: i32) -> (i32, i32, i32) {
    %c0_i32 = arith.constant 0 : i32
    %c0_i32_0 = arith.constant 0 : i32
    %c0_i32_1 = arith.constant 0 : i32
    return %arg0, %c0_i32, %c0_i32_0 : i32, i32, i32
  }
}

</mosaic_0001>

<bundles_post_ra>
// kernel: tpu_custom_call.1
= control target key start
LH: loop header
LB: loop body
LE: loop exit
PB: predicated region body
PF: predicated region fallthrough
CT: control target
= control target key end

     0   :  { %13 = vsyncpa [#allocation3], 0  ;;  %s2364_s0 = inlined_call_operand.vmem [shape: f32[2,16,64], index: 0, kind: input, shape index: {}]   ;;  %s2365_s1 = inlined_call_operand.vmem [shape: f32[64,256], index: 1, kind: input, shape index: {}]   ;;  %s2366_s2 = inlined_call_operand.vmem [shape: bf16[128,144], index: 2, kind: input, shape index: {}]   ;;  %s2367_s3 = inlined_call_operand.hbm [shape: f32[128,256], index: 3, kind: input, shape index: {}]   ;;  %s2368_s4 = inlined_call_operand.vmem [shape: f32[9,1,256], index: 4, kind: input, shape index: {}]   ;;  %s2369_s5 = inlined_call_operand.hbm [shape: f32[2,128,256], index: 5, kind: output, shape index: {0}]   ;;  %s2370_s6 = inlined_call_operand.vmem [shape: f32[2,128,1], index: 6, kind: output, shape index: {1}]   ;;  %s2371_s7 = inlined_call_operand.vmem [shape: f32[2,128,1], index: 7, kind: output, shape index: {2}]  }
   0x1   :  { %14 = vsyncpa [#allocation4], 0 }
   0x2   :  { %16 = vsyncpa [#allocation4 + $0x1], 0  ;;  %s1675_s24 = smov 0   ;;  %s1677_s25 = smov 0  }
   0x3   :  { %s1679_s26 = smov 0   ;;  %s1681_s27 = smov 0  }
   0x4 LB: > { %s1696_s28 = sadd.s32 4294967295, %s1619_s27   ;;  %s1349_s29 = sadd.s32 4294967294, %s1619_s27   ;;  %s1619_s27 = sphi %s1681_s27, %s2387_s27   ;;  %s1615_s26 = sphi %s1679_s26, %s2386_s26   ;;  %s1611_s25 = sphi %s1677_s25, %s2385_s25   ;;  %s1607_s24 = sphi %s1675_s24, %s2384_s24  }
   0x5   : > { %s1700_s30 = sadd.s32 1, %s1619_s27   ;;  %s139_s8 = sadd.s32 1, %s1615_s26 }
   0x6   : > { %s136_s9 = ssub.s32 %s1619_s27, %s1700_s30  ;;  %p149_p0 = scmp.ne.s32.totalorder %s1615_s26, %s1611_s25 }
   0x7   : > { %p137_p1 = scmp.eq.s32.totalorder %s136_s9, 0  ;;  %p150_p2 = scmp.eq.s32.totalorder %s1696_s28, 1 }
   0x8   : > { %p155_p3 = scmp.ne.s32.totalorder %s1611_s25, %s1607_s24  ;;  %p156_p4 = scmp.eq.s32.totalorder %s1349_s29, 1 }
   0x9   : > { %s1711_s10 = scalar_select %p137_p1, %s1615_s26, %s139_s8  }
   0xa   : > { %p1713_p5 = por %p150_p2, %p149_p0  ;;  %p1717_p6 = por %p156_p4, %p155_p3 }
   0xb   : > { %p1350_p7 = scmp.ge.s32.totalorder %s1619_s27, 1  ;;  %p215_p8 = scmp.lt.s32.totalorder %s1619_s27, 3 }
   0xc   : > { %s2375_s11 = scalar_select %p1713_p5, 1, 0 }
   0xd   : > { %s2376_s12 = scalar_select %p1717_p6, 1, 0 }
   0xe   : > { %p2372_p9 = scmp.eq.s32.totalorder %s1696_s28, 0  ;;  %p1724_p10 = pnand %p1350_p7, %p215_p8 }
   0xf   : > { %s1621_s14 = smov [#allocation2]   ;;  %s1525_s19 = scalar_lea.hbm %s2367_s3, 4096 }
  0x10   : > { %s2377_s13 = scalar_select %p1724_p10, 1, 0 }
  0x11   : > { %s233_s15 = sshll.u32 %s1621_s14, 4  ;;  %p1445_p11 = pneg %p1724_p10  ;;  %s234_s15 = int_to_ptr.vmem [resolvable:$true] %s233_s15 }
  0x12   : > { %p1526_p13 = scmp.ne.s32.totalorder %s2367_s3, %s1525_s19  ;;  %p1532_p3 = scmp.lt.u32.totalorder %s1525_s19, %s2367_s3 }
  0x13   : > { %p1732_p12 = pnand %p2372_p9, %p1445_p11 }
  0x15   : > { %p1527_p0 = pneg %p1732_p12 }
  0x17   : > { %p1528_p1 = pnand %p1527_p0, %p1526_p13 }
  0x19   : > { %p1529_p2 = pneg %p1528_p1 }
  0x1b   : > { %p1534_p4 = pnand %p1532_p3, %p1529_p2 }
  0x1d   : > { %1537 = shalt.err (!%p1534_p4)
}
  0x1e   : > { %s1538_s29 = scalar_lea.vmem %s234_s15, 4096  ;;  %p1546_p9 = scmp.lt.s32.totalorder %s234_s15, %s234_s15 }
  0x1f   : > { %p1539_p7 = scmp.ne.s32.totalorder %s234_s15, %s1538_s29  ;;  %p1547_p6 = scmp.lt.s32.totalorder %s1538_s29, %s1538_s29 }
  0x21   : > { %p1541_p8 = pnand %p1539_p7, %p1527_p0  ;;  %p1548_p5 = por %p1547_p6, %p1546_p9 }
  0x23   : > { %p1542_p11 = pneg %p1541_p8 }
  0x25   : > { %p1549_p10 = pnand %p1548_p5, %p1542_p11 }
  0x27   : > { %1552 = shalt.err (!%p1549_p10)
}
  0x28   : > { %s1622_s8 = smov 256   ;;  %s1623_s9 = smov 16  }
  0x29   : > { %1448 = dma.hbm_to_vmem [thread:$0]  (!%p1732_p12), %s2367_s3, 4096, %s234_s15, [#allocation3], %s1622_s8, %s1622_s8, %s1623_s9  }
  0x2a   : > { %p2379_p13 = scmp.ne.s32.totalorder %s2377_s13, 0 }
  0x2b   : > { %p2380_p1 = scmp.eq.s32.totalorder (!%p2379_p13), %s1696_s28, 0 }
  0x2c   : > { %260 = sbr.rel (%p2379_p13) target bundleno = 1012 (0x3f4), region = 40 }
  0x33   : > { %1598 = dma.done.wait (%p2380_p1), [#allocation3], 4096   ;;  %p2381_p0 = pmov %p2380_p1 }
  0x34   : > { %v1624_v0 = vmov 0.0   ;;  %v321_v1 = vld [vmem:[%s2365_s1 + $0x8] sm:$0xff]  ;;  %v323_v2 = vld [vmem:[%s2365_s1 + $0x18] sm:$0xff]  ;;  %v320_v3 = vld [vmem:[%s2365_s1] sm:$0xff]  ;;  %p302_p5 = scmp.lt.s32.totalorder %s1696_s28, 1  ;;  %vm336_vm0 = vcmask 523264   ;;  %v428_v27 = vlaneseq }
  0x35   : > { %1600 = vsyncadd (%p2381_p0), [#allocation3], 4294963200  ;;  %407 = vmatprep.mubr.f32.mxu0 %v1624_v0  ;;  %v1405_v4 = vpack.c.bf16 %v323_v2, %v321_v1  ;;  %v322_v5 = vld [vmem:[%s2365_s1 + $0x10] sm:$0xff]  ;;  %v325_v6 = vld [vmem:[%s2365_s1 + $0x28] sm:$0xff]  ;;  %s1625_s9 = smov 17   ;;  %s1626_s14 = smov 16  }
  0x36   : > { %v327_v7 = vld [vmem:[%s2365_s1 + $0x38] sm:$0xff]  ;;  %v1407_v8 = vpack.c.bf16 %v322_v5, %v320_v3  ;;  %v324_v10 = vld [vmem:[%s2365_s1 + $0x20] sm:$0xff]  ;;  %v326_v11 = vld [vmem:[%s2365_s1 + $0x30] sm:$0xff]  ;;  %s1802_s18 = scalar_select %p302_p5, %s1696_s28, 1  ;;  %v438_v28 = vshrl.u32 %v428_v27, 7  ;;  %vm816_vm1 = vcmask 130048  }
  0x37   : > { %v1409_v9 = vpack.c.bf16 %v327_v7, %v325_v6  ;;  %v329_v12 = vld [vmem:[%s2365_s1 + $0x48] sm:$0xff]  ;;  %1406 = vmatprep.subr.bf16.mxu0 %v1405_v4  ;;  %v331_v13 = vld [vmem:[%s2365_s1 + $0x58] sm:$0xff]  ;;  %v1411_v14 = vpack.c.bf16 %v326_v11, %v324_v10  ;;  %v328_v15 = vld [vmem:[%s2365_s1 + $0x40] sm:$0xff]  ;;  %s1627_s17 = smov 15   ;;  %s1628_s19 = smov 1   ;;  %v1851_v56 = vand.u32 127, %v428_v27 }
  0x38   : > { %1408 = vmatpush1.bf16.msra.mxu0 %v1407_v8  ;;  %v1413_v16 = vpack.c.bf16 %v331_v13, %v329_v12  ;;  %v330_v17 = vld [vmem:[%s2365_s1 + $0x50] sm:$0xff]  ;;  %v333_v18 = vld [vmem:[%s2365_s1 + $0x68] sm:$0xff]  ;;  %v335_v19 = vld [vmem:[%s2365_s1 + $0x78] sm:$0xff]  ;;  %s1401_s13 = sshll.u32 %s1802_s18, 4  ;;  %v1815_v29 = vsub.s32 0, %v438_v28  ;;  %v1817_v30 = vsub.s32 1, %v438_v28 }
  0x39   : > { %1410 = vmatprep.subr.bf16.mxu0 %v1409_v9  ;;  %v332_v20 = vld [vmem:[%s2365_s1 + $0x60] sm:$0xff]  ;;  %v334_v21 = vld [vmem:[%s2365_s1 + $0x70] sm:$0xff]  ;;  %v1415_v22 = vpack.c.bf16 %v330_v17, %v328_v15  ;;  %v1417_v23 = vpack.c.bf16 %v335_v19, %v333_v18  ;;  %s306_s23 = scalar_lea.vmem %s2364_s0, %s1401_s13  ;;  %v1367_v31 = vld [vmem:[%s2368_s4 + $0x8] sm:$0x3]  ;;  %s1629_s16 = smov 127   ;;  %vm430_vm2 = vcmp.lt.s32.totalorder %v1851_v56, 17 }
  0x3a   : > { %v1419_v24 = vpack.c.bf16 %v334_v21, %v332_v20  ;;  %v318_v25 = vld [vmem:[%s306_s23] sm:$0xff]  ;;  %v319_v26 = vld [vmem:[%s306_s23 + $0x8] sm:$0xff]  ;;  %v555_v34 = vrot.slane %v1367_v31, %v1815_v29  ;;  %v559_v35 = vrot.slane %v1367_v31, %v1817_v30  ;;  %s1630_s20 = smov 113   ;;  %s1631_s15 = smov 112   ;;  %v1506_v45 = vld [vmem:[%s2366_s2 + $0x34] ss:$8 sps:$4 sm:$0xff]  }
  0x3b   : > { %s1632_s13 = smov 111   ;;  %v1503_v44 = vld [vmem:[%s2366_s2 + $0x4] ss:$8 sps:$4 sm:$0xff]   ;;  %1391 = vmatprep.mubr.msk.bf16.mxu1 %vm816_vm1, %v1506_v45  ;;  %v435_v59 = vld [vmem:[%s2368_s4] sm:$0x3]  ;;  %vm461_vm3 = vcmp.lt.s32.totalorder %v1851_v56, 16 }
  0x3c   : > { %1412 = vmatpush1.bf16.msra.mxu0 %v1411_v14  ;;  %v440_v62 = vrot.slane %v435_v59, %v1815_v29  ;;  %v1364_v63 = vld [vmem:[%s2368_s4 + $0x2] sm:$0x3]  ;;  %vm493_vm4 = vcmp.lt.s32.totalorder %v1851_v56, 15  ;;  %v1365_v6 = vld [vmem:[%s2368_s4 + $0x4] sm:$0x3]  ;;  %vm525_vm5 = vcmp.lt.s32.totalorder %v1851_v56, 1 }
  0x3d   : > { %1414 = vmatprep.subr.bf16.mxu0 %v1413_v16  ;;  %v472_v4 = vrot.slane %v1364_v63, %v1815_v29  ;;  %v476_v5 = vrot.slane %v1364_v63, %v1817_v30  ;;  %v504_v16 = vrot.slane %v1365_v6, %v1815_v29  ;;  %v508_v19 = vrot.slane %v1365_v6, %v1817_v30  ;;  %v1369_v6 = vld [vmem:[%s2368_s4 + $0xc] sm:$0x3]  ;;  %s285_s21 = sand.u32 1, %s1611_s25   ;;  %s1402_s29 = sshll.u32 %s1802_s18, 7 }
  0x3e   : > { %vm576_vm6 = vcmp.lt.s32.totalorder %v1851_v56, 127  ;;  %vm608_vm7 = vcmp.lt.s32.totalorder %v1851_v56, 113  ;;  %vm640_vm8 = vcmp.lt.s32.totalorder %v1851_v56, 112  ;;  %vm672_vm9 = vcmp.lt.s32.totalorder %v1851_v56, 111  ;;  %v1507_v56 = vld [vmem:[%s2366_s2 + $0x14] ss:$8 sps:$4 sm:$0xff]  }
  0x3f   : > { %s1355_s22 = sshll.u32 %s285_s21, 8  ;;  %vm1082_vm10 = vcmask 7168   ;;  %p2382_p9 = scmp.ne.s32.totalorder %s2375_s11, 0 }
  0x40   : > { %1416 = vmatpush1.bf16.msra.mxu0 %v1415_v22  ;;  %s2046_s23 = scalar_lea.vmem [#allocation5], %s1355_s22  ;;  %s2283_s22 = scalar_lea.sflag [#allocation4], %s285_s21 }
  0x41   : > { %1418 = vmatprep.subr.bf16.mxu0 %v1417_v23 }
  0x44   : > { %1420 = vmatpush1.bf16.msra.mxu0 %v1419_v24 }
  0x47   : > { %1362 = vmatmul.mubr.msk.f32.vlgmr.msra.gmra.mrb[0].mxu0 %vm336_vm0, %v318_v25  ;;  %v1366_v25 = vld [vmem:[%s2368_s4 + $0x6] sm:$0x3] }
  0x48   : > { %413 = vmatprep.mubr.f32.mxu0 %v1624_v0  ;;  %v444_v0 = vrot.slane %v435_v59, %v1817_v30 }
  0x4b   : > { %1363 = vmatmul.mubr.msk.f32.gmra.mrb[2].mxu0 %vm336_vm0, %v319_v26 }
  0x4c   : > { %1388 = vmatprep.mubr.msk.bf16.mxu0 %vm816_vm1, %v1503_v44 }
 0x11a   : > { %v409_v32 = vpop.f32.mrb[0].mxu0 }
 0x11b   : > { %420 = vrot.lane.b32.xlu0 %v409_v32, %s1625_s9  ;;  %v411_v33 = vpop.f32.mrb[1].mxu0  ;;  %v562_v38 = vmul.f32 %v555_v34, %v409_v32 }
 0x11c   : > { %424 = vrot.lane.b32.xlu1 %v411_v33, %s1625_s9  ;;  %v563_v40 = vmul.f32 %v559_v35, %v411_v33 }
 0x11e   : > { %v415_v36 = vpop.f32.mrb[2].mxu0 }
 0x11f   : > { %453 = vrot.lane.b32.xlu0 %v409_v32, %s1626_s14  ;;  %v417_v37 = vpop.f32.mrb[3].mxu0  ;;  %v564_v39 = vmul.f32 %v555_v34, %v415_v36  ;;  %v536_v34 = vrot.slane %v1366_v25, %v1815_v29 }
 0x120   : > { %455 = vrot.lane.b32.xlu1 %v415_v36, %s1626_s14  ;;  %v565_v41 = vmul.f32 %v559_v35, %v417_v37  ;;  %v540_v35 = vrot.slane %v1366_v25, %v1817_v30 }
 0x121   : > { %v1828_v42 = vpack.c.bf16 %v564_v39, %v562_v38 }
 0x122   : > { %v1830_v43 = vpack.c.bf16 %v565_v41, %v563_v40 }
 0x123   : > { %485 = vrot.lane.b32.xlu0 %v409_v32, %s1627_s17 }
 0x124   : > { %487 = vrot.lane.b32.xlu1 %v415_v36, %s1627_s17 }
 0x127   : > { %517 = vrot.lane.b32.xlu0 %v409_v32, %s1628_s19 }
 0x128   : > { %519 = vrot.lane.b32.xlu1 %v415_v36, %s1628_s19 }
 0x12b   : > { %457 = vrot.lane.b32.xlu0 %v411_v33, %s1626_s14 }
 0x12c   : > { %570 = vrot.lane.b32.xlu1 %v415_v36, %s1629_s16 }
 0x12f   : > { %489 = vrot.lane.b32.xlu0 %v411_v33, %s1627_s17 }
 0x130   : > { %602 = vrot.lane.b32.xlu1 %v415_v36, %s1630_s20 }
 0x133   : > { %521 = vrot.lane.b32.xlu0 %v411_v33, %s1628_s19 }
 0x134   : > { %634 = vrot.lane.b32.xlu1 %v415_v36, %s1631_s15 }
 0x137   : > { %422 = vrot.lane.b32.xlu0 %v415_v36, %s1625_s9 }
 0x138   : > { %426 = vrot.lane.b32.xlu1 %v417_v37, %s1625_s9 }
 0x13b   : > { %568 = vrot.lane.b32.xlu0 %v409_v32, %s1629_s16 }
 0x13c   : > { %459 = vrot.lane.b32.xlu1 %v417_v37, %s1626_s14 }
 0x13f   : > { %572 = vrot.lane.b32.xlu0 %v411_v33, %s1629_s16 }
 0x140   : > { %491 = vrot.lane.b32.xlu1 %v417_v37, %s1627_s17  ;;  %s2206_s17 = scalar_lea.vmem %s2370_s6, %s1402_s29 }
 0x143   : > { %600 = vrot.lane.b32.xlu0 %v409_v32, %s1630_s20 }
 0x144   : > { %523 = vrot.lane.b32.xlu1 %v417_v37, %s1628_s19  ;;  %s1404_s19 = sshll.u32 %s1696_s28, 12  ;;  %s1633_s28 = smov [#allocation5]  }
 0x147   : > { %604 = vrot.lane.b32.xlu0 %v411_v33, %s1630_s20 }
 0x148   : > { %666 = vrot.lane.b32.xlu1 %v415_v36, %s1632_s13 }
 0x14b   : > { %632 = vrot.lane.b32.xlu0 %v409_v32, %s1631_s15 }
 0x14c   : > { %574 = vrot.lane.b32.xlu1 %v417_v37, %s1629_s16  ;;  %s1219_s16 = sshll.u32 %s2046_s23, 4  ;;  %s2279_s16 = int_to_ptr.vmem [resolvable:$true] %s1219_s16 }
 0x14d   : > { %s1553_s8 = scalar_lea.vmem %s2279_s16, 4096 }
 0x14e   : > { %p1554_p6 = scmp.ne.s32.totalorder %s2279_s16, %s1553_s8 }
 0x14f   : > { %636 = vrot.lane.b32.xlu0 %v411_v33, %s1631_s15 }
 0x150   : > { %606 = vrot.lane.b32.xlu1 %v417_v37, %s1630_s20  ;;  %p1555_p10 = pnand %p1554_p6, %p2382_p9 }
 0x152   : > { %p1556_p12 = pneg %p1555_p10 }
 0x153   : > { %664 = vrot.lane.b32.xlu0 %v409_v32, %s1632_s13 }
 0x154   : > { %638 = vrot.lane.b32.xlu1 %v417_v37, %s1631_s15 }
 0x157   : > { %668 = vrot.lane.b32.xlu0 %v411_v33, %s1632_s13 }
 0x158   : > { %670 = vrot.lane.b32.xlu1 %v417_v37, %s1632_s13  ;;  %s2277_s13 = scalar_lea.hbm %s2369_s5, %s1404_s19 }
 0x18d   : > { %v421_v46 = vpop.permute.xlu0 %420 }
 0x18e   : > { %v425_v47 = vpop.permute.xlu1 %424 }
 0x18f   : > { %v433_v1 = vsel %vm430_vm2, %v425_v47, %v421_v46  ;;  %v431_v2 = vsel %vm430_vm2, %v421_v46, %v425_v47 }
 0x190   : > { %v447_v8 = vmul.f32 %v440_v62, %v433_v1  ;;  %v448_v12 = vmul.f32 %v444_v0, %v431_v2 }
 0x191   : > { %v454_v48 = vpop.permute.xlu0 %453 }
 0x192   : > { %v456_v49 = vpop.permute.xlu1 %455 }
 0x195   : > { %v486_v50 = vpop.permute.xlu0 %485 }
 0x196   : > { %v488_v51 = vpop.permute.xlu1 %487 }
 0x199   : > { %v1844_v52 = vpop.permute.xlu0 %517 }
 0x19a   : > { %v1846_v53 = vpop.permute.xlu1 %519 }
 0x19d   : > { %v458_v54 = vpop.permute.xlu0 %457 }
 0x19e   : > { %v1848_v55 = vpop.permute.xlu1 %570  ;;  %v464_v9 = vsel %vm461_vm3, %v458_v54, %v454_v48  ;;  %v462_v13 = vsel %vm461_vm3, %v454_v48, %v458_v54 }
 0x19f   : > { %v479_v18 = vmul.f32 %v472_v4, %v464_v9  ;;  %v480_v23 = vmul.f32 %v476_v5, %v462_v13 }
 0x1a1   : > { %v490_v57 = vpop.permute.xlu0 %489 }
 0x1a2   : > { %v1853_v58 = vpop.permute.xlu1 %602  ;;  %v494_v24 = vsel %vm493_vm4, %v486_v50, %v490_v57  ;;  %v496_v28 = vsel %vm493_vm4, %v490_v57, %v486_v50 }
 0x1a3   : > { %v511_v39 = vmul.f32 %v504_v16, %v496_v28  ;;  %v512_v40 = vmul.f32 %v508_v19, %v494_v24 }
 0x1a5   : > { %v522_v60 = vpop.permute.xlu0 %521 }
 0x1a6   : > { %v1859_v61 = vpop.permute.xlu1 %634  ;;  %v528_v45 = vsel %vm525_vm5, %v522_v60, %v1844_v52  ;;  %v526_v48 = vsel %vm525_vm5, %v1844_v52, %v522_v60  ;;  %v1368_v52 = vld [vmem:[%s2368_s4 + $0xa] sm:$0x3] }
 0x1a7   : > { %v543_v59 = vmul.f32 %v536_v34, %v528_v45  ;;  %v544_v63 = vmul.f32 %v540_v35, %v526_v48 }
 0x1a9   : > { %v423_v3 = vpop.permute.xlu0 %422 }
 0x1aa   : > { %v427_v7 = vpop.permute.xlu1 %426 }
 0x1ab   : > { %v432_v10 = vsel %vm430_vm2, %v423_v3, %v427_v7  ;;  %v434_v11 = vsel %vm430_vm2, %v427_v7, %v423_v3 }
 0x1ac   : > { %v449_v14 = vmul.f32 %v440_v62, %v434_v11  ;;  %v450_v15 = vmul.f32 %v444_v0, %v432_v10  ;;  %v619_v10 = vrot.slane %v1369_v6, %v1815_v29  ;;  %v623_v11 = vrot.slane %v1369_v6, %v1817_v30  ;;  %v1515_v6 = vld [vmem:[%s2366_s2 + $0x54] ss:$8 sps:$4 sm:$0xff]  }
 0x1ad   : > { %v569_v17 = vpop.permute.xlu0 %568 }
 0x1ae   : > { %v451_v20 = vpack.c.bf16 %v449_v14, %v447_v8  ;;  %v460_v21 = vpop.permute.xlu1 %459  ;;  %v452_v22 = vpack.c.bf16 %v450_v15, %v448_v12 }
 0x1af   : > { %v463_v26 = vsel %vm461_vm3, %v456_v49, %v460_v21  ;;  %v465_v27 = vsel %vm461_vm3, %v460_v21, %v456_v49 }
 0x1b0   : > { %v481_v31 = vmul.f32 %v472_v4, %v465_v27  ;;  %v482_v32 = vmul.f32 %v476_v5, %v463_v26  ;;  %841 = vmatprep.subr.bf16.mxu0 %v452_v22  ;;  %1421 = vmatprep.subr.bf16.mxu1 %v452_v22  ;;  %v591_v5 = vrot.slane %v1368_v52, %v1817_v30 }
 0x1b1   : > { %v573_v33 = vpop.permute.xlu0 %572  ;;  %842 = vmatpush1.bf16.msra.mxu0 %v451_v20  ;;  %1430 = vmatpush1.bf16.msra.mxu1 %v451_v20 }
 0x1b2   : > { %v483_v36 = vpack.c.bf16 %v481_v31, %v479_v18  ;;  %v492_v37 = vpop.permute.xlu1 %491  ;;  %v484_v38 = vpack.c.bf16 %v482_v32, %v480_v23  ;;  %v577_v7 = vsel %vm576_vm6, %v569_v17, %v573_v33  ;;  %v579_v8 = vsel %vm576_vm6, %v573_v33, %v569_v17  ;;  %v1370_v17 = vld [vmem:[%s2368_s4 + $0xe] sm:$0x3] }
 0x1b3   : > { %v495_v41 = vsel %vm493_vm4, %v488_v51, %v492_v37  ;;  %v497_v44 = vsel %vm493_vm4, %v492_v37, %v488_v51  ;;  %v595_v14 = vmul.f32 %v591_v5, %v579_v8  ;;  %v651_v22 = vrot.slane %v1370_v17, %v1815_v29  ;;  %v1518_v8 = vld [vmem:[%s2366_s2 + $0x50] ss:$8 sps:$4 sm:$0xff]  }
 0x1b4   : > { %v513_v46 = vmul.f32 %v504_v16, %v497_v44  ;;  %v514_v47 = vmul.f32 %v508_v19, %v495_v41  ;;  %843 = vmatprep.subr.bf16.mxu0 %v484_v38  ;;  %1422 = vmatprep.subr.bf16.mxu1 %v484_v38  ;;  %v655_v23 = vrot.slane %v1370_v17, %v1817_v30 }
 0x1b5   : > { %v601_v49 = vpop.permute.xlu0 %600  ;;  %844 = vmatpush1.bf16.msra.mxu0 %v483_v36  ;;  %1431 = vmatpush1.bf16.msra.mxu1 %v483_v36 }
 0x1b6   : > { %v515_v50 = vpack.c.bf16 %v513_v46, %v511_v39  ;;  %v524_v54 = vpop.permute.xlu1 %523  ;;  %v516_v57 = vpack.c.bf16 %v514_v47, %v512_v40 }
 0x1b7   : > { %v527_v51 = vsel %vm525_vm5, %v1846_v53, %v524_v54  ;;  %v529_v62 = vsel %vm525_vm5, %v524_v54, %v1846_v53  ;;  %v587_v53 = vrot.slane %v1368_v52, %v1815_v29 }
 0x1b8   : > { %v545_v60 = vmul.f32 %v536_v34, %v529_v62  ;;  %v546_v0 = vmul.f32 %v540_v35, %v527_v51  ;;  %845 = vmatprep.subr.bf16.mxu0 %v516_v57  ;;  %1423 = vmatprep.subr.bf16.mxu1 %v516_v57 }
 0x1b9   : > { %v605_v1 = vpop.permute.xlu0 %604  ;;  %846 = vmatpush1.bf16.msra.mxu0 %v515_v50  ;;  %1432 = vmatpush1.bf16.msra.mxu1 %v515_v50  ;;  %v594_v13 = vmul.f32 %v587_v53, %v577_v7  ;;  %v1517_v7 = vld [vmem:[%s2366_s2 + $0x20] ss:$8 sps:$4 sm:$0xff]  }
 0x1ba   : > { %v547_v2 = vpack.c.bf16 %v545_v60, %v543_v59  ;;  %v1921_v3 = vpop.permute.xlu1 %666  ;;  %v548_v4 = vpack.c.bf16 %v546_v0, %v544_v63  ;;  %v609_v18 = vsel %vm608_vm7, %v601_v49, %v605_v1 }
 0x1bb   : > { %v626_v26 = vmul.f32 %v619_v10, %v609_v18 }
 0x1bc   : > { %847 = vmatprep.subr.bf16.mxu0 %v548_v4  ;;  %1424 = vmatprep.subr.bf16.mxu1 %v548_v4  ;;  %v1511_v4 = vld [vmem:[%s2366_s2 + $0x10] ss:$8 sps:$4 sm:$0xff]  }
 0x1bd   : > { %v633_v9 = vpop.permute.xlu0 %632  ;;  %848 = vmatpush1.bf16.msra.mxu0 %v547_v2  ;;  %1433 = vmatpush1.bf16.msra.mxu1 %v547_v2  ;;  %v1504_v2 = vld [vmem:[%s2366_s2 + $0x30] ss:$8 sps:$4 sm:$0xff]  }
 0x1be   : > { %v575_v12 = vpop.permute.xlu1 %574  ;;  %849 = vmatprep.subr.bf16.mxu0 %v1830_v43  ;;  %1425 = vmatprep.subr.bf16.mxu1 %v1830_v43  ;;  %v611_v43 = vsel %vm608_vm7, %v605_v1, %v601_v49  ;;  %v1501_v1 = vld [vmem:[%s2366_s2] ss:$8 sps:$4 sm:$0xff]  }
 0x1bf   : > { %v578_v15 = vsel %vm576_vm6, %v1848_v55, %v575_v12  ;;  %v580_v16 = vsel %vm576_vm6, %v575_v12, %v1848_v55  ;;  %v627_v27 = vmul.f32 %v623_v11, %v611_v43  ;;  %v1524_v12 = vld [vmem:[%s2366_s2 + $0x70] ss:$8 sps:$4 sm:$0xff]  }
 0x1c0   : > { %v596_v19 = vmul.f32 %v587_v53, %v578_v15  ;;  %v597_v20 = vmul.f32 %v591_v5, %v580_v16  ;;  %v1512_v53 = vld [vmem:[%s2366_s2 + $0x40] ss:$8 sps:$4 sm:$0xff]   ;;  %v1513_v5 = vld [vmem:[%s2366_s2 + $0x24] ss:$8 sps:$4 sm:$0xff]   ;;  %v714_v43 = vld [vmem:[#allocation2 + $0x10] sm:$0xff] }
 0x1c1   : > { %v637_v21 = vpop.permute.xlu0 %636  ;;  %850 = vmatpush1.bf16.msra.mxu0 %v1828_v42  ;;  %1434 = vmatpush1.bf16.msra.mxu1 %v1828_v42  ;;  %v1371_v42 = vld [vmem:[%s2368_s4 + $0x10] sm:$0x3]  ;;  %v713_v15 = vld [vmem:[#allocation2 + $0x8] sm:$0xff] }
 0x1c2   : > { %v598_v55 = vpack.c.bf16 %v596_v19, %v594_v13  ;;  %v607_v24 = vpop.permute.xlu1 %606  ;;  %v599_v25 = vpack.c.bf16 %v597_v20, %v595_v14  ;;  %v641_v32 = vsel %vm640_vm8, %v633_v9, %v637_v21  ;;  %v643_v35 = vsel %vm640_vm8, %v637_v21, %v633_v9  ;;  %v1519_v9 = vld [vmem:[%s2366_s2 + $0x64] ss:$8 sps:$4 sm:$0xff]   ;;  %v726_v19 = vld [vmem:[#allocation2 + $0x70] sm:$0xff] }
 0x1c3   : > { %v610_v28 = vsel %vm608_vm7, %v1853_v58, %v607_v24  ;;  %v612_v31 = vsel %vm608_vm7, %v607_v24, %v1853_v58  ;;  %v683_v39 = vrot.slane %v1371_v42, %v1815_v29  ;;  %v658_v40 = vmul.f32 %v651_v22, %v641_v32  ;;  %v712_v13 = vld [vmem:[#allocation2] sm:$0xff]  ;;  %v725_v16 = vld [vmem:[#allocation2 + $0x68] sm:$0xff]  ;;  %v727_v24 = vld [vmem:[#allocation2 + $0x78] sm:$0xff] }
 0x1c4   : > { %v628_v33 = vmul.f32 %v619_v10, %v610_v28  ;;  %v629_v34 = vmul.f32 %v623_v11, %v612_v31  ;;  %851 = vmatprep.subr.bf16.mxu0 %v599_v25  ;;  %1426 = vmatprep.subr.bf16.mxu1 %v599_v25  ;;  %v687_v45 = vrot.slane %v1371_v42, %v1817_v30  ;;  %v1521_v10 = vld [vmem:[%s2366_s2 + $0x60] ss:$8 sps:$4 sm:$0xff]   ;;  %v1522_v11 = vld [vmem:[%s2366_s2 + $0x74] ss:$8 sps:$4 sm:$0xff]  }
 0x1c5   : > { %v665_v36 = vpop.permute.xlu0 %664  ;;  %852 = vmatpush1.bf16.msra.mxu0 %v598_v55  ;;  %1435 = vmatpush1.bf16.msra.mxu1 %v598_v55  ;;  %v659_v46 = vmul.f32 %v655_v23, %v643_v35  ;;  %v724_v14 = vld [vmem:[#allocation2 + $0x60] sm:$0xff] }
 0x1c6   : > { %v630_v37 = vpack.c.bf16 %v628_v33, %v626_v26  ;;  %v639_v38 = vpop.permute.xlu1 %638  ;;  %v631_v58 = vpack.c.bf16 %v629_v34, %v627_v27 }
 0x1c7   : > { %v642_v41 = vsel %vm640_vm8, %v1859_v61, %v639_v38  ;;  %v644_v44 = vsel %vm640_vm8, %v639_v38, %v1859_v61  ;;  %v716_v38 = vld [vmem:[#allocation2 + $0x20] sm:$0xff] }
 0x1c8   : > { %v660_v47 = vmul.f32 %v651_v22, %v642_v41  ;;  %v661_v48 = vmul.f32 %v655_v23, %v644_v44  ;;  %853 = vmatprep.subr.bf16.mxu0 %v631_v58  ;;  %1427 = vmatprep.subr.bf16.mxu1 %v631_v58  ;;  %v715_v23 = vld [vmem:[#allocation2 + $0x18] sm:$0xff]  ;;  %v728_v58 = vld [vmem:[#allocation2 + $0x80] sm:$0xff] }
 0x1c9   : > { %v669_v49 = vpop.permute.xlu0 %668  ;;  %854 = vmatpush1.bf16.msra.mxu0 %v630_v37  ;;  %1436 = vmatpush1.bf16.msra.mxu1 %v630_v37 }
 0x1ca   : > { %v662_v29 = vpack.c.bf16 %v660_v47, %v658_v40  ;;  %v673_v50 = vsel %vm672_vm9, %v665_v36, %v669_v49  ;;  %v675_v54 = vsel %vm672_vm9, %v669_v49, %v665_v36  ;;  %v671_v57 = vpop.permute.xlu1 %670  ;;  %v663_v59 = vpack.c.bf16 %v661_v48, %v659_v46  ;;  %v729_v40 = vld [vmem:[#allocation2 + $0x88] sm:$0xff]  ;;  %v730_v46 = vld [vmem:[#allocation2 + $0x90] sm:$0xff] }
 0x1cb   : > { %v690_v61 = vmul.f32 %v683_v39, %v673_v50  ;;  %v691_v51 = vmul.f32 %v687_v45, %v675_v54  ;;  %v674_v30 = vsel %vm672_vm9, %v1921_v3, %v671_v57  ;;  %v676_v62 = vsel %vm672_vm9, %v671_v57, %v1921_v3  ;;  %v1509_v3 = vld [vmem:[%s2366_s2 + $0x44] ss:$8 sps:$4 sm:$0xff]   ;;  %v719_v57 = vld [vmem:[#allocation2 + $0x38] sm:$0xff] }
 0x1cc   : > { %v692_v63 = vmul.f32 %v683_v39, %v674_v30  ;;  %v693_v52 = vmul.f32 %v687_v45, %v676_v62  ;;  %855 = vmatprep.subr.bf16.mxu0 %v663_v59  ;;  %1428 = vmatprep.subr.bf16.mxu1 %v663_v59  ;;  %v717_v39 = vld [vmem:[#allocation2 + $0x28] sm:$0xff]  ;;  %v718_v45 = vld [vmem:[#allocation2 + $0x30] sm:$0xff]  ;;  %v731_v59 = vld [vmem:[#allocation2 + $0x98] sm:$0xff] }
 0x1cd   : > { %856 = vmatpush1.bf16.msra.mxu0 %v662_v29  ;;  %1437 = vmatpush1.bf16.msra.mxu1 %v662_v29 }
 0x1ce   : > { %v694_v60 = vpack.c.bf16 %v692_v63, %v690_v61  ;;  %v695_v0 = vpack.c.bf16 %v693_v52, %v691_v51 }
 0x1d0   : > { %857 = vmatprep.subr.bf16.mxu0 %v695_v0  ;;  %1429 = vmatprep.subr.bf16.mxu1 %v695_v0 }
 0x1d1   : > { %858 = vmatpush1.bf16.msra.mxu0 %v694_v60  ;;  %1438 = vmatpush1.bf16.msra.mxu1 %v694_v60 }
 0x1d4   : > { %874 = vmatmul.mubr.bf16.vlgmr.msra.gmra.mrb[4].mxu0 %v1501_v1  ;;  %904 = vmatmul.mubr.bf16.vlgmr.msra.gmra.mrb[0].mxu1 %v1504_v2 }
 0x1d5   : > { %1389 = vmatprep.mubr.msk.bf16.mxu0 %vm816_vm1, %v1507_v56  ;;  %1392 = vmatprep.mubr.msk.bf16.mxu1 %vm816_vm1, %v1509_v3 }
 0x1dc   : > { %884 = vmatmul.mubr.bf16.gmra.mrb[8].mxu0 %v1511_v4  ;;  %914 = vmatmul.mubr.bf16.gmra.mrb[4].mxu1 %v1512_v53  ;;  %v720_v4 = vld [vmem:[#allocation2 + $0x40] sm:$0xff] }
 0x1dd   : > { %1390 = vmatprep.mubr.msk.bf16.mxu0 %vm816_vm1, %v1513_v5  ;;  %1393 = vmatprep.mubr.msk.bf16.mxu1 %vm816_vm1, %v1515_v6  ;;  %v732_v53 = vld [vmem:[#allocation2 + $0xa0] sm:$0xff]  ;;  %v721_v5 = vld [vmem:[#allocation2 + $0x48] sm:$0xff] }
 0x1de   : > { %v733_v6 = vld [vmem:[#allocation2 + $0xa8] sm:$0xff] }
 0x1e4   : > { %894 = vmatmul.mubr.bf16.gmra.mrb[12].mxu0 %v1517_v7  ;;  %924 = vmatmul.mubr.bf16.gmra.mrb[8].mxu1 %v1518_v8 }
 0x1e5   : > { %1394 = vmatprep.mubr.msk.bf16.mxu1 %vm816_vm1, %v1519_v9  ;;  %v734_v9 = vld [vmem:[#allocation2 + $0xb0] sm:$0xff] }
 0x1ec   : > { %934 = vmatmul.mubr.bf16.gmra.mrb[12].mxu1 %v1521_v10 }
 0x1ed   : > { %1395 = vmatprep.mubr.msk.bf16.mxu1 %vm816_vm1, %v1522_v11  ;;  %v722_v11 = vld [vmem:[#allocation2 + $0x50] sm:$0xff] }
 0x1f4   : > { %944 = vmatmul.mubr.bf16.gmra.mrb[16].mxu1 %v1524_v12 }
 0x2a7   : > { %v875_v17 = vpop.f32.mrb[4].mxu0  ;;  %v905_v18 = vpop.f32.mrb[0].mxu1 }
 0x2a8   : > { %v2038_v20 = vadd.f32 %v875_v17, %v712_v13  ;;  %v2040_v21 = vadd.f32 %v905_v18, %v724_v14  ;;  %v877_v55 = vpop.f32.mrb[5].mxu0  ;;  %v907_v22 = vpop.f32.mrb[1].mxu1  ;;  %v723_v17 = vld [vmem:[#allocation2 + $0x58] sm:$0xff] }
 0x2a9   : > { %v2042_v25 = vadd.f32 %v877_v55, %v713_v15  ;;  %v2044_v26 = vadd.f32 %v907_v22, %v725_v16  ;;  %v879_v27 = vpop.f32.mrb[6].mxu0  ;;  %v909_v28 = vpop.f32.mrb[2].mxu1  ;;  %v735_v16 = vld [vmem:[#allocation2 + $0xb8] sm:$0xff] }
 0x2aa   : > { %954 = vst [vmem:[%s2046_s23] sm:$0xff] %v2038_v20  ;;  %966 = vst [vmem:[%s2046_s23 + $0x60] sm:$0xff] %v2040_v21  ;;  %v2052_v31 = vadd.f32 %v879_v27, %v714_v43  ;;  %v2054_v42 = vadd.f32 %v909_v28, %v726_v19  ;;  %v881_v32 = vpop.f32.mrb[7].mxu0  ;;  %v911_v33 = vpop.f32.mrb[3].mxu1 }
 0x2ab   : > { %955 = vst [vmem:[%s2046_s23 + $0x8] sm:$0xff] %v2042_v25  ;;  %967 = vst [vmem:[%s2046_s23 + $0x68] sm:$0xff] %v2044_v26  ;;  %v2060_v34 = vadd.f32 %v881_v32, %v715_v23  ;;  %v2062_v35 = vadd.f32 %v911_v33, %v727_v24  ;;  %v1004_v36 = vadd.f32 %v2044_v26, %v2040_v21 }
 0x2ac   : > { %v986_v37 = vadd.f32 %v2042_v25, %v2038_v20  ;;  %956 = vst [vmem:[%s2046_s23 + $0x10] sm:$0xff] %v2052_v31  ;;  %968 = vst [vmem:[%s2046_s23 + $0x70] sm:$0xff] %v2054_v42 }
 0x2ad   : > { %957 = vst [vmem:[%s2046_s23 + $0x18] sm:$0xff] %v2060_v34  ;;  %969 = vst [vmem:[%s2046_s23 + $0x78] sm:$0xff] %v2062_v35  ;;  %1005 = vadd.xlane.f32.xlu1 %v1004_v36  ;;  %v989_v47 = vadd.f32 %v2060_v34, %v2052_v31  ;;  %v1007_v48 = vadd.f32 %v2062_v35, %v2054_v42 }
 0x2ae   : > { %987 = vadd.xlane.f32.xlu0 %v986_v37  ;;  %v736_v37 = vld [vmem:[#allocation2 + $0xc0] sm:$0xff] }
 0x2af   : > { %v885_v41 = vpop.f32.mrb[8].mxu0  ;;  %v915_v44 = vpop.f32.mrb[4].mxu1 }
 0x2b0   : > { %v2080_v49 = vadd.f32 %v885_v41, %v716_v38  ;;  %v2082_v29 = vadd.f32 %v915_v44, %v728_v58  ;;  %v887_v50 = vpop.f32.mrb[9].mxu0  ;;  %v917_v54 = vpop.f32.mrb[5].mxu1  ;;  %v737_v58 = vld [vmem:[#allocation2 + $0xc8] sm:$0xff] }
 0x2b1   : > { %v2084_v61 = vadd.f32 %v887_v50, %v717_v39  ;;  %v2086_v51 = vadd.f32 %v917_v54, %v729_v40  ;;  %v889_v30 = vpop.f32.mrb[10].mxu0  ;;  %v919_v62 = vpop.f32.mrb[6].mxu1  ;;  %990 = vadd.xlane.f32.xlu1 %v989_v47  ;;  %v738_v40 = vld [vmem:[#allocation2 + $0xd0] sm:$0xff] }
 0x2b2   : > { %1008 = vadd.xlane.f32.xlu0 %v1007_v48  ;;  %958 = vst [vmem:[%s2046_s23 + $0x20] sm:$0xff] %v2080_v49  ;;  %970 = vst [vmem:[%s2046_s23 + $0x80] sm:$0xff] %v2082_v29  ;;  %v2092_v63 = vadd.f32 %v889_v30, %v718_v45  ;;  %v2094_v52 = vadd.f32 %v919_v62, %v730_v46  ;;  %v891_v60 = vpop.f32.mrb[11].mxu0  ;;  %v921_v0 = vpop.f32.mrb[7].mxu1  ;;  %v739_v46 = vld [vmem:[#allocation2 + $0xd8] sm:$0xff]  ;;  %v740_v62 = vld [vmem:[#allocation2 + $0xe0] sm:$0xff] }
 0x2b3   : > { %959 = vst [vmem:[%s2046_s23 + $0x28] sm:$0xff] %v2084_v61  ;;  %971 = vst [vmem:[%s2046_s23 + $0x88] sm:$0xff] %v2086_v51  ;;  %v2100_v1 = vadd.f32 %v891_v60, %v719_v57  ;;  %v2102_v2 = vadd.f32 %v921_v0, %v731_v59  ;;  %v1010_v56 = vadd.f32 %v2086_v51, %v2082_v29  ;;  %v741_v60 = vld [vmem:[#allocation2 + $0xe8] sm:$0xff] }
 0x2b4   : > { %v992_v3 = vadd.f32 %v2084_v61, %v2080_v49  ;;  %960 = vst [vmem:[%s2046_s23 + $0x30] sm:$0xff] %v2092_v63  ;;  %972 = vst [vmem:[%s2046_s23 + $0x90] sm:$0xff] %v2094_v52 }
 0x2b5   : > { %961 = vst [vmem:[%s2046_s23 + $0x38] sm:$0xff] %v2100_v1  ;;  %973 = vst [vmem:[%s2046_s23 + $0x98] sm:$0xff] %v2102_v2  ;;  %1011 = vadd.xlane.f32.xlu1 %v1010_v56  ;;  %v995_v10 = vadd.f32 %v2100_v1, %v2092_v63  ;;  %v1013_v36 = vadd.f32 %v2102_v2, %v2094_v52  ;;  %v742_v56 = vld [vmem:[#allocation2 + $0xf0] sm:$0xff] }
 0x2b6   : > { %993 = vadd.xlane.f32.xlu0 %v992_v3 }
 0x2b7   : > { %v895_v7 = vpop.f32.mrb[12].mxu0  ;;  %v925_v8 = vpop.f32.mrb[8].mxu1 }
 0x2b8   : > { %v2118_v12 = vadd.f32 %v895_v7, %v720_v4  ;;  %v2120_v13 = vadd.f32 %v925_v8, %v732_v53  ;;  %v897_v14 = vpop.f32.mrb[13].mxu0  ;;  %v927_v15 = vpop.f32.mrb[9].mxu1 }
 0x2b9   : > { %v2122_v18 = vadd.f32 %v897_v14, %v721_v5  ;;  %v2124_v43 = vadd.f32 %v927_v15, %v733_v6  ;;  %v929_v19 = vpop.f32.mrb[10].mxu1  ;;  %v899_v55 = vpop.f32.mrb[14].mxu0  ;;  %v743_v5 = vld [vmem:[#allocation2 + $0xf8] sm:$0xff] }
 0x2ba   : > { %996 = vadd.xlane.f32.xlu0 %v995_v10  ;;  %962 = vst [vmem:[%s2046_s23 + $0x40] sm:$0xff] %v2118_v12  ;;  %974 = vst [vmem:[%s2046_s23 + $0xa0] sm:$0xff] %v2120_v13  ;;  %v2130_v22 = vadd.f32 %v929_v19, %v734_v9  ;;  %v2132_v23 = vadd.f32 %v899_v55, %v722_v11  ;;  %v931_v24 = vpop.f32.mrb[11].mxu1  ;;  %v901_v27 = vpop.f32.mrb[15].mxu0 }
 0x2bb   : > { %963 = vst [vmem:[%s2046_s23 + $0x48] sm:$0xff] %v2122_v18  ;;  %975 = vst [vmem:[%s2046_s23 + $0xa8] sm:$0xff] %v2124_v43  ;;  %v2138_v28 = vadd.f32 %v931_v24, %v735_v16  ;;  %v2140_v32 = vadd.f32 %v901_v27, %v723_v17  ;;  %v998_v33 = vadd.f32 %v2122_v18, %v2118_v12 }
 0x2bc   : > { %976 = vst [vmem:[%s2046_s23 + $0xb0] sm:$0xff] %v2130_v22  ;;  %964 = vst [vmem:[%s2046_s23 + $0x50] sm:$0xff] %v2132_v23  ;;  %v1016_v41 = vadd.f32 %v2124_v43, %v2120_v13 }
 0x2bd   : > { %977 = vst [vmem:[%s2046_s23 + $0xb8] sm:$0xff] %v2138_v28  ;;  %965 = vst [vmem:[%s2046_s23 + $0x58] sm:$0xff] %v2140_v32  ;;  %999 = vadd.xlane.f32.xlu1 %v998_v33  ;;  %v1001_v38 = vadd.f32 %v2140_v32, %v2132_v23  ;;  %v1019_v30 = vadd.f32 %v2138_v28, %v2130_v22 }
 0x2be   : > { %1014 = vadd.xlane.f32.xlu0 %v1013_v36 }
 0x2bf   : > { %v935_v39 = vpop.f32.mrb[12].mxu1 }
 0x2c0   : > { %v2158_v44 = vadd.f32 %v935_v39, %v736_v37  ;;  %v937_v45 = vpop.f32.mrb[13].mxu1 }
 0x2c1   : > { %v2160_v47 = vadd.f32 %v937_v45, %v737_v58  ;;  %v939_v48 = vpop.f32.mrb[14].mxu1  ;;  %1017 = vadd.xlane.f32.xlu1 %v1016_v41 }
 0x2c2   : > { %1002 = vadd.xlane.f32.xlu0 %v1001_v38  ;;  %978 = vst [vmem:[%s2046_s23 + $0xc0] sm:$0xff] %v2158_v44  ;;  %v2164_v50 = vadd.f32 %v939_v48, %v738_v40  ;;  %v941_v54 = vpop.f32.mrb[15].mxu1 }
 0x2c3   : > { %979 = vst [vmem:[%s2046_s23 + $0xc8] sm:$0xff] %v2160_v47  ;;  %v2168_v57 = vadd.f32 %v941_v54, %v739_v46  ;;  %v1022_v59 = vadd.f32 %v2160_v47, %v2158_v44 }
 0x2c4   : > { %980 = vst [vmem:[%s2046_s23 + $0xd0] sm:$0xff] %v2164_v50 }
 0x2c5   : > { %981 = vst [vmem:[%s2046_s23 + $0xd8] sm:$0xff] %v2168_v57  ;;  %1023 = vadd.xlane.f32.xlu1 %v1022_v59  ;;  %v1025_v3 = vadd.f32 %v2168_v57, %v2164_v50 }
 0x2c6   : > { %1020 = vadd.xlane.f32.xlu0 %v1019_v30 }
 0x2c7   : > { %v945_v0 = vpop.f32.mrb[16].mxu1 }
 0x2c8   : > { %v2180_v4 = vadd.f32 %v945_v0, %v740_v62  ;;  %v947_v53 = vpop.f32.mrb[17].mxu1 }
 0x2c9   : > { %v2182_v6 = vadd.f32 %v947_v53, %v741_v60  ;;  %v949_v7 = vpop.f32.mrb[18].mxu1 }
 0x2ca   : > { %1026 = vadd.xlane.f32.xlu0 %v1025_v3  ;;  %982 = vst [vmem:[%s2046_s23 + $0xe0] sm:$0xff] %v2180_v4  ;;  %v2186_v8 = vadd.f32 %v949_v7, %v742_v56  ;;  %v951_v9 = vpop.f32.mrb[19].mxu1 }
 0x2cb   : > { %983 = vst [vmem:[%s2046_s23 + $0xe8] sm:$0xff] %v2182_v6  ;;  %v2190_v10 = vadd.f32 %v951_v9, %v743_v5  ;;  %v1028_v11 = vadd.f32 %v2182_v6, %v2180_v4 }
 0x2cc   : > { %984 = vst [vmem:[%s2046_s23 + $0xf0] sm:$0xff] %v2186_v8 }
 0x2cd   : > { %985 = vst [vmem:[%s2046_s23 + $0xf8] sm:$0xff] %v2190_v10  ;;  %1029 = vadd.xlane.f32.xlu1 %v1028_v11  ;;  %v1031_v14 = vadd.f32 %v2190_v10, %v2186_v8  ;;  %s1557_s23 = sshll.u32 %s1633_s28, 4  ;;  %s1558_s23 = int_to_ptr.vmem [resolvable:$false] %s1557_s23 }
 0x2ce   : > { %s1559_s9 = scalar_lea.vmem %s1558_s23, 8192  ;;  %p1560_p2 = scmp.lt.s32.totalorder %s2279_s16, %s1558_s23 }
 0x2cf   : > { %1032 = vadd.xlane.f32.xlu0 %v1031_v14  ;;  %p1561_p3 = scmp.lt.s32.totalorder %s1559_s9, %s1553_s8 }
 0x2d1   : > { %p1562_p4 = por %p1561_p3, %p1560_p2 }
 0x2d3   : > { %p1563_p7 = pnand %p1562_p4, %p1556_p12 }
 0x33a   : > { %v1006_v15 = vpop.xlane.xlu1 %1005 }
 0x33b   : > { %v988_v16 = vpop.xlane.xlu0 %987  ;;  %v1040_v17 = vmul.f32 0.00390625, %v1006_v15 }
 0x33c   : > { %v1034_v19 = vmul.f32 0.00390625, %v988_v16 }
 0x33d   : > { %1089 = vst.msk [vmem:[%s2206_s17 + $0x30] sm:$0xff] %vm1082_vm10, %v1040_v17  ;;  %v1062_v27 = vsub.f32 %v2040_v21, %v1040_v17  ;;  %v1063_v33 = vsub.f32 %v2044_v26, %v1040_v17 }
 0x33e   : > { %1083 = vst.msk [vmem:[%s2206_s17] sm:$0xff] %vm1082_vm10, %v1034_v19  ;;  %v1050_v55 = vsub.f32 %v2038_v20, %v1034_v19  ;;  %v1051_v24 = vsub.f32 %v2042_v25, %v1034_v19  ;;  %v991_v36 = vpop.xlane.xlu1 %990 }
 0x33f   : > { %v1009_v37 = vpop.xlane.xlu0 %1008  ;;  %v1035_v38 = vmul.f32 0.00390625, %v991_v36  ;;  %v1111_v41 = vmul.f32 %v1062_v27, %v1062_v27  ;;  %v1112_v45 = vmul.f32 %v1063_v33, %v1063_v33 }
 0x340   : > { %v1041_v58 = vmul.f32 0.00390625, %v1009_v37  ;;  %v1099_v39 = vmul.f32 %v1050_v55, %v1050_v55  ;;  %v1100_v40 = vmul.f32 %v1051_v24, %v1051_v24 }
 0x341   : > { %1084 = vst.msk [vmem:[%s2206_s17 + $0x8] sm:$0xff] %vm1082_vm10, %v1035_v38  ;;  %v1052_v25 = vsub.f32 %v2052_v31, %v1035_v38  ;;  %v1053_v21 = vsub.f32 %v2060_v34, %v1035_v38  ;;  %v1149_v0 = vadd.f32 %v1112_v45, %v1111_v41 }
 0x342   : > { %1090 = vst.msk [vmem:[%s2206_s17 + $0x38] sm:$0xff] %vm1082_vm10, %v1041_v58  ;;  %v1131_v20 = vadd.f32 %v1100_v40, %v1099_v39  ;;  %v1064_v26 = vsub.f32 %v2054_v42, %v1041_v58  ;;  %v1012_v46 = vpop.xlane.xlu1 %1011  ;;  %v1065_v54 = vsub.f32 %v2062_v35, %v1041_v58 }
 0x343   : > { %v994_v48 = vpop.xlane.xlu0 %993  ;;  %v1042_v59 = vmul.f32 0.00390625, %v1012_v46  ;;  %v1101_v62 = vmul.f32 %v1052_v25, %v1052_v25  ;;  %v1102_v60 = vmul.f32 %v1053_v21, %v1053_v21 }
 0x344   : > { %v1036_v30 = vmul.f32 0.00390625, %v994_v48  ;;  %1132 = vadd.xlane.f32.xlu1 %v1131_v20  ;;  %v1113_v56 = vmul.f32 %v1064_v26, %v1064_v26  ;;  %v1114_v3 = vmul.f32 %v1065_v54, %v1065_v54 }
 0x345   : > { %1091 = vst.msk [vmem:[%s2206_s17 + $0x40] sm:$0xff] %vm1082_vm10, %v1042_v59  ;;  %v1134_v31 = vadd.f32 %v1102_v60, %v1101_v62  ;;  %v1066_v35 = vsub.f32 %v2082_v29, %v1042_v59  ;;  %v1067_v5 = vsub.f32 %v2086_v51, %v1042_v59 }
 0x346   : > { %1085 = vst.msk [vmem:[%s2206_s17 + $0x10] sm:$0xff] %vm1082_vm10, %v1036_v30  ;;  %v1054_v42 = vsub.f32 %v2080_v49, %v1036_v30  ;;  %v1055_v34 = vsub.f32 %v2084_v61, %v1036_v30  ;;  %v1152_v16 = vadd.f32 %v1114_v3, %v1113_v56 }
 0x347   : > { %v997_v53 = vpop.xlane.xlu0 %996  ;;  %1135 = vadd.xlane.f32.xlu0 %v1134_v31  ;;  %v1115_v14 = vmul.f32 %v1066_v35, %v1066_v35  ;;  %v1116_v15 = vmul.f32 %v1067_v5, %v1067_v5 }
 0x348   : > { %v1037_v7 = vmul.f32 0.00390625, %v997_v53  ;;  %1150 = vadd.xlane.f32.xlu1 %v1149_v0  ;;  %v1103_v9 = vmul.f32 %v1054_v42, %v1054_v42  ;;  %v1104_v11 = vmul.f32 %v1055_v34, %v1055_v34 }
 0x349   : > { %v1155_v33 = vadd.f32 %v1116_v15, %v1115_v14 }
 0x34a   : > { %1086 = vst.msk [vmem:[%s2206_s17 + $0x18] sm:$0xff] %vm1082_vm10, %v1037_v7  ;;  %v1137_v49 = vadd.f32 %v1104_v11, %v1103_v9  ;;  %v1056_v61 = vsub.f32 %v2092_v63, %v1037_v7  ;;  %v1057_v29 = vsub.f32 %v2100_v1, %v1037_v7  ;;  %v1000_v17 = vpop.xlane.xlu1 %999 }
 0x34b   : > { %v1015_v19 = vpop.xlane.xlu0 %1014  ;;  %v1038_v51 = vmul.f32 0.00390625, %v1000_v17  ;;  %1153 = vadd.xlane.f32.xlu0 %v1152_v16 }
 0x34c   : > { %v1043_v55 = vmul.f32 0.00390625, %v1015_v19  ;;  %1138 = vadd.xlane.f32.xlu1 %v1137_v49  ;;  %v1105_v24 = vmul.f32 %v1056_v61, %v1056_v61  ;;  %v1106_v27 = vmul.f32 %v1057_v29, %v1057_v29 }
 0x34d   : > { %1087 = vst.msk [vmem:[%s2206_s17 + $0x20] sm:$0xff] %vm1082_vm10, %v1038_v51  ;;  %v1058_v63 = vsub.f32 %v2118_v12, %v1038_v51  ;;  %v1059_v1 = vsub.f32 %v2122_v18, %v1038_v51 }
 0x34e   : > { %1092 = vst.msk [vmem:[%s2206_s17 + $0x48] sm:$0xff] %vm1082_vm10, %v1043_v55  ;;  %v1140_v36 = vadd.f32 %v1106_v27, %v1105_v24  ;;  %v1068_v37 = vsub.f32 %v2094_v52, %v1043_v55  ;;  %v1018_v38 = vpop.xlane.xlu1 %1017  ;;  %v1069_v39 = vsub.f32 %v2102_v2, %v1043_v55 }
 0x34f   : > { %v1003_v58 = vpop.xlane.xlu0 %1002  ;;  %v1044_v40 = vmul.f32 0.00390625, %v1018_v38  ;;  %v1107_v45 = vmul.f32 %v1058_v63, %v1058_v63  ;;  %v1108_v20 = vmul.f32 %v1059_v1, %v1059_v1 }
 0x350   : > { %v1039_v41 = vmul.f32 0.00390625, %v1003_v58  ;;  %1156 = vadd.xlane.f32.xlu1 %v1155_v33  ;;  %1141 = vadd.xlane.f32.xlu0 %v1140_v36  ;;  %v1117_v25 = vmul.f32 %v1068_v37, %v1068_v37  ;;  %v1118_v21 = vmul.f32 %v1069_v39, %v1069_v39 }
 0x351   : > { %1093 = vst.msk [vmem:[%s2206_s17 + $0x50] sm:$0xff] %vm1082_vm10, %v1044_v40  ;;  %v1143_v12 = vadd.f32 %v1108_v20, %v1107_v45  ;;  %v1070_v52 = vsub.f32 %v2120_v13, %v1044_v40  ;;  %v1071_v18 = vsub.f32 %v2124_v43, %v1044_v40 }
 0x352   : > { %1088 = vst.msk [vmem:[%s2206_s17 + $0x28] sm:$0xff] %vm1082_vm10, %v1039_v41  ;;  %v1060_v2 = vsub.f32 %v2132_v23, %v1039_v41  ;;  %v1024_v26 = vpop.xlane.xlu1 %1023  ;;  %v1158_v48 = vadd.f32 %v1118_v21, %v1117_v25  ;;  %v1061_v54 = vsub.f32 %v2140_v32, %v1039_v41 }
 0x353   : > { %v1021_v46 = vpop.xlane.xlu0 %1020  ;;  %v1046_v59 = vmul.f32 0.00390625, %v1024_v26  ;;  %v1119_v62 = vmul.f32 %v1070_v52, %v1070_v52  ;;  %v1120_v60 = vmul.f32 %v1071_v18, %v1071_v18 }
 0x354   : > { %v1045_v30 = vmul.f32 0.00390625, %v1021_v46  ;;  %1144 = vadd.xlane.f32.xlu1 %v1143_v12  ;;  %1159 = vadd.xlane.f32.xlu0 %v1158_v48  ;;  %v1109_v0 = vmul.f32 %v1060_v2, %v1060_v2  ;;  %v1110_v56 = vmul.f32 %v1061_v54, %v1061_v54 }
 0x355   : > { %1095 = vst.msk [vmem:[%s2206_s17 + $0x60] sm:$0xff] %vm1082_vm10, %v1046_v59  ;;  %v1161_v13 = vadd.f32 %v1120_v60, %v1119_v62  ;;  %v1074_v43 = vsub.f32 %v2158_v44, %v1046_v59  ;;  %v1075_v23 = vsub.f32 %v2160_v47, %v1046_v59 }
 0x356   : > { %1094 = vst.msk [vmem:[%s2206_s17 + $0x58] sm:$0xff] %vm1082_vm10, %v1045_v30  ;;  %v1072_v32 = vsub.f32 %v2130_v22, %v1045_v30  ;;  %v1146_v31 = vadd.f32 %v1110_v56, %v1109_v0  ;;  %v1073_v42 = vsub.f32 %v2138_v28, %v1045_v30 }
 0x357   : > { %v1027_v3 = vpop.xlane.xlu0 %1026  ;;  %v1123_v35 = vmul.f32 %v1074_v43, %v1074_v43  ;;  %v1124_v53 = vmul.f32 %v1075_v23, %v1075_v23 }
 0x358   : > { %v1047_v34 = vmul.f32 0.00390625, %v1027_v3  ;;  %1162 = vadd.xlane.f32.xlu1 %v1161_v13  ;;  %v1121_v5 = vmul.f32 %v1072_v32, %v1072_v32  ;;  %1147 = vadd.xlane.f32.xlu0 %v1146_v31  ;;  %v1122_v7 = vmul.f32 %v1073_v42, %v1073_v42 }
 0x359   : > { %v1167_v9 = vadd.f32 %v1124_v53, %v1123_v35 }
 0x35a   : > { %1096 = vst.msk [vmem:[%s2206_s17 + $0x68] sm:$0xff] %vm1082_vm10, %v1047_v34  ;;  %v1076_v44 = vsub.f32 %v2164_v50, %v1047_v34  ;;  %v1077_v22 = vsub.f32 %v2168_v57, %v1047_v34  ;;  %v1030_v47 = vpop.xlane.xlu1 %1029  ;;  %v1164_v11 = vadd.f32 %v1122_v7, %v1121_v5 }
 0x35b   : > { %v1048_v14 = vmul.f32 0.00390625, %v1030_v47 }
 0x35c   : > { %1168 = vadd.xlane.f32.xlu1 %v1167_v9  ;;  %v1125_v28 = vmul.f32 %v1076_v44, %v1076_v44  ;;  %v1126_v15 = vmul.f32 %v1077_v22, %v1077_v22  ;;  %1165 = vadd.xlane.f32.xlu0 %v1164_v11  ;;  %v1033_v16 = vpop.xlane.xlu0 %1032 }
 0x35d   : > { %1097 = vst.msk [vmem:[%s2206_s17 + $0x70] sm:$0xff] %vm1082_vm10, %v1048_v14  ;;  %v1049_v49 = vmul.f32 0.00390625, %v1033_v16  ;;  %v1078_v29 = vsub.f32 %v2180_v4, %v1048_v14  ;;  %v1079_v50 = vsub.f32 %v2182_v6, %v1048_v14 }
 0x35e   : > { %v1170_v61 = vadd.f32 %v1126_v15, %v1125_v28 }
 0x35f   : > { %1098 = vst.msk [vmem:[%s2206_s17 + $0x78] sm:$0xff] %vm1082_vm10, %v1049_v49  ;;  %v1127_v57 = vmul.f32 %v1078_v29, %v1078_v29  ;;  %v1128_v17 = vmul.f32 %v1079_v50, %v1079_v50  ;;  %v1080_v19 = vsub.f32 %v2186_v8, %v1049_v49  ;;  %v1081_v51 = vsub.f32 %v2190_v10, %v1049_v49 }
 0x360   : > { %1171 = vadd.xlane.f32.xlu0 %v1170_v61 }
 0x361   : > { %v1173_v55 = vadd.f32 %v1128_v17, %v1127_v57  ;;  %v1129_v24 = vmul.f32 %v1080_v19, %v1080_v19  ;;  %v1130_v27 = vmul.f32 %v1081_v51, %v1081_v51 }
 0x363   : > { %1174 = vadd.xlane.f32.xlu1 %v1173_v55  ;;  %v1176_v33 = vadd.f32 %v1130_v27, %v1129_v24 }
 0x365   : > { %1177 = vadd.xlane.f32.xlu0 %v1176_v33 }
 0x366   : > { %1566 = shalt.err (!%p1563_p7)
}
 0x367   : > { %s1567_s21 = scalar_lea.hbm %s2277_s13, 4096  ;;  %s1571_s20 = scalar_lea.hbm %s2369_s5, 8192 }
 0x368   : > { %p1568_p8 = scmp.ne.s32.totalorder %s2277_s13, %s1567_s21  ;;  %p1572_p1 = scmp.lt.u32.totalorder %s2277_s13, %s2369_s5 }
 0x369   : > { %p1573_p0 = scmp.lt.u32.totalorder %s1571_s20, %s1567_s21  ;;  %p1575_p6 = scmp.lt.u32.totalorder %s1567_s21, %s2277_s13 }
 0x36a   : > { %p1569_p11 = pnand %p1568_p8, %p2382_p9 }
 0x36b   : > { %p1574_p5 = por %p1573_p0, %p1572_p1 }
 0x36c   : > { %p1570_p13 = pneg %p1569_p11 }
 0x36d   : > { %p1576_p10 = por %p1575_p6, %p1574_p5 }
 0x36f   : > { %p1577_p12 = pnand %p1576_p10, %p1570_p13 }
 0x371   : > { %1580 = shalt.err (!%p1577_p12)
}
 0x372   : > { %s1634_s8 = smov 256   ;;  %s2313_s17 = scalar_lea.vmem %s2371_s7, %s1402_s29 }
 0x373   : > { %1443 = dma.vmem_to_hbm [thread:$0]  (%p2382_p9), %s2279_s16, 4096, %s2277_s13, %s2283_s22, %s1634_s8, %s1634_s8, %s1626_s14  }
 0x3d1   : > { %v1133_v4 = vpop.xlane.xlu1 %1132 }
 0x3d2   : > { %1179 = vst.msk [vmem:[%s2313_s17] sm:$0xff] %vm1082_vm10, %v1133_v4 }
 0x3d4   : > { %v1136_v8 = vpop.xlane.xlu0 %1135 }
 0x3d5   : > { %v1151_v6 = vpop.xlane.xlu1 %1150  ;;  %1180 = vst.msk [vmem:[%s2313_s17 + $0x8] sm:$0xff] %vm1082_vm10, %v1136_v8 }
 0x3d6   : > { %1185 = vst.msk [vmem:[%s2313_s17 + $0x30] sm:$0xff] %vm1082_vm10, %v1151_v6 }
 0x3d8   : > { %v1154_v36 = vpop.xlane.xlu0 %1153 }
 0x3d9   : > { %v1139_v10 = vpop.xlane.xlu1 %1138  ;;  %1186 = vst.msk [vmem:[%s2313_s17 + $0x38] sm:$0xff] %vm1082_vm10, %v1154_v36 }
 0x3da   : > { %1181 = vst.msk [vmem:[%s2313_s17 + $0x10] sm:$0xff] %vm1082_vm10, %v1139_v10 }
 0x3dd   : > { %v1157_v63 = vpop.xlane.xlu1 %1156  ;;  %v1142_v1 = vpop.xlane.xlu0 %1141 }
 0x3de   : > { %1187 = vst.msk [vmem:[%s2313_s17 + $0x40] sm:$0xff] %vm1082_vm10, %v1157_v63  ;;  %1182 = vst.msk [vmem:[%s2313_s17 + $0x18] sm:$0xff] %vm1082_vm10, %v1142_v1 }
 0x3e1   : > { %v1145_v37 = vpop.xlane.xlu1 %1144  ;;  %v1160_v38 = vpop.xlane.xlu0 %1159 }
 0x3e2   : > { %1183 = vst.msk [vmem:[%s2313_s17 + $0x20] sm:$0xff] %vm1082_vm10, %v1145_v37  ;;  %1188 = vst.msk [vmem:[%s2313_s17 + $0x48] sm:$0xff] %vm1082_vm10, %v1160_v38 }
 0x3e5   : > { %v1163_v58 = vpop.xlane.xlu1 %1162  ;;  %v1148_v39 = vpop.xlane.xlu0 %1147 }
 0x3e6   : > { %1189 = vst.msk [vmem:[%s2313_s17 + $0x50] sm:$0xff] %vm1082_vm10, %v1163_v58  ;;  %1184 = vst.msk [vmem:[%s2313_s17 + $0x28] sm:$0xff] %vm1082_vm10, %v1148_v39 }
 0x3e9   : > { %v1169_v40 = vpop.xlane.xlu1 %1168  ;;  %v1166_v41 = vpop.xlane.xlu0 %1165 }
 0x3ea   : > { %1191 = vst.msk [vmem:[%s2313_s17 + $0x60] sm:$0xff] %vm1082_vm10, %v1169_v40  ;;  %1190 = vst.msk [vmem:[%s2313_s17 + $0x58] sm:$0xff] %vm1082_vm10, %v1166_v41 }
 0x3ed   : > { %v1172_v45 = vpop.xlane.xlu0 %1171 }
 0x3ee   : > { %1192 = vst.msk [vmem:[%s2313_s17 + $0x68] sm:$0xff] %vm1082_vm10, %v1172_v45 }
 0x3f0   : > { %v1175_v20 = vpop.xlane.xlu1 %1174 }
 0x3f1   : > { %1193 = vst.msk [vmem:[%s2313_s17 + $0x70] sm:$0xff] %vm1082_vm10, %v1175_v20 }
 0x3f2   : > { %v1178_v25 = vpop.xlane.xlu0 %1177 }
 0x3f3   : > { %1194 = vst.msk [vmem:[%s2313_s17 + $0x78] sm:$0xff] %vm1082_vm10, %v1178_v25 }
 0x3f4 PF: > { %p1455_p9 = scmp.ge.s32.totalorder %s1619_s27, 2  ;;  %s1240_s11 = sand.u32 1, %s1607_s24  }
 0x3f5   : > { %p2383_p2 = scmp.ne.s32.totalorder %s2376_s12, 0  ;;  %s1241_s18 = scalar_lea.sflag [#allocation4], %s1240_s11 }
 0x3f7   : > { %p1450_p3 = pnand %p1455_p9, %p2383_p2 }
 0x3f9   : > { %1602 = dma.done.wait (!%p1450_p3), %s1241_s18, 4096  }
 0x3fa   : > { %1604 = vsyncadd (!%p1450_p3), %s1241_s18, 4294963200  ;;  %p19_p4 = scmp.ge.s32.totalorder %s1700_s30, 4   ;;  %s2384_s24 = smov %s1611_s25 }
 0x3fb   : > { %s2385_s25 = smov %s1615_s26  ;;  %s2386_s26 = smov %s1711_s10 }
 0x3fc   : > { %s2387_s27 = smov %s1700_s30  ;;  %21 = sbr.rel (!%p19_p4) target bundleno = 4 (0x4), region = 112 }
 0x403   :  { %1262 = vsyncpa [#allocation3], 1 }
 0x404   :  { %1264 = vsyncpa [#allocation3 + $0x1], 1 }
 0x405   :  { %1265 = vsyncpa [#allocation4], 1 }
 0x406   :  { %1267 = vsyncpa [#allocation4 + $0x1], 1 }

</bundles_post_ra>
